<compile_context>
chip_gen: v5e
topology: v5e:2x2
jax: 0.10.0
libtpu: 0.0.40
codegen_flags: <defaults>
</compile_context>

<pallas_src>
import jax
import jax.numpy as jnp
from jax.experimental import pallas as pl
from jax.experimental.pallas import tpu as pltpu

LANE = 128  # TPU lane width; output channels are padded to a multiple of this.


def _round_up(x, m):
    return (x + m - 1) // m * m


def _make_block_kernel(*, stride, Ho, Wo, Hq, Cp, out_dtype):
    """Fused BasicBlock kernel (one batch image per grid step)."""
    s = stride
    # The 1x1 shortcut (stride s, no padding) reads x[ho*s, wo*s], which is the
    # "center tap" (kh=kw=1) of the pad-1 input -> same phase-indexed access
    # pattern as the 3x3 taps.
    p_sc = (1 % s) * s + (1 % s)   # phase index of the center tap
    q_sc = 1 // s                  # row offset inside that phase
    c_sc = 1 // s                  # column offset inside that phase

    def kernel(x_ref, w1_ref, b1_ref, w2_ref, wsc_ref, bo_ref, o_ref, mid_ref):
        # x_ref  : (1, s*s*Hq, Wq, Cin)  bf16   phase-split, pad-1 input
        # w1_ref : (9, Cin, Cp)          bf16   conv1 weights (BN1 scale folded)
        # b1_ref : (1, Cp)               f32    BN1 bias
        # w2_ref : (9, Cp, Cp)           bf16   conv2 weights (BN2 scale folded)
        # wsc_ref: (Cin, Cp)             bf16   1x1 projection (or identity)
        # bo_ref : (1, Cp)               f32    BN2 bias + shortcut-BN bias
        # o_ref  : (1, Ho, Wo, Cp)       f32    block output (lane-dense Cp)
        # mid_ref: (Ho+2, Wo+2, Cp)      f32    VMEM-only conv1 output + 1px halo

        # Zero the intermediate (gives conv2 its zero padding halo for free).
        mid_ref[...] = jnp.zeros_like(mid_ref)

        # ---- conv1 (3x3, stride s, pad 1) + folded BN1 + ReLU -> mid --------
        @pl.loop(0, Ho)
        def _conv1_row(ho):
            acc = jnp.zeros((Wo, Cp), jnp.float32)
            for kh in range(3):
                for kw in range(3):
                    p = (kh % s) * s + (kw % s)
                    row = x_ref[0, p * Hq + (kh // s) + ho]        # (Wq, Cin)
                    win = row[kw // s: kw // s + Wo, :]            # (Wo, Cin)
                    acc = acc + jnp.dot(win, w1_ref[kh * 3 + kw],
                                        preferred_element_type=jnp.float32)
            acc = jnp.maximum(acc + b1_ref[...], 0.0)              # BN bias+ReLU
            mid_ref[1 + ho, 1:1 + Wo, :] = acc                     # interior row

        # ---- conv2 (3x3, stride 1, pad 1) + BN2 + shortcut + ReLU -> out ----
        @pl.loop(0, Ho)
        def _conv2_row(ho):
            acc = jnp.zeros((Wo, Cp), jnp.float32)
            for kh in range(3):
                for kw in range(3):
                    row = mid_ref[ho + kh]                         # (Wo+2, Cp)
                    win = row[kw:kw + Wo, :].astype(jnp.bfloat16)
                    acc = acc + jnp.dot(win, w2_ref[kh * 3 + kw],
                                        preferred_element_type=jnp.float32)
            # Fused shortcut: 1x1(stride s) projection, or identity matrix.
            xrow = x_ref[0, p_sc * Hq + q_sc + ho]                 # (Wq, Cin)
            xwin = xrow[c_sc: c_sc + Wo, :]
            acc = acc + jnp.dot(xwin, wsc_ref[...],
                                preferred_element_type=jnp.float32)
            acc = jnp.maximum(acc + bo_ref[...], 0.0)              # final ReLU
            o_ref[0, ho] = acc.astype(out_dtype)

    return kernel


def _fold_bn(w, bn, cp):
    """Fold eval-mode BN scale into conv weights; zero-pad Cout -> cp; bf16."""
    gamma, beta, mean, var = bn
    scale = gamma / jnp.sqrt(var + 1e-5)
    bias = beta - mean * scale
    w = w * scale                                   # broadcast over last (Cout)
    cout = w.shape[-1]
    pad = [(0, 0)] * (w.ndim - 1) + [(0, cp - cout)]
    w = jnp.pad(w, pad).astype(jnp.bfloat16)
    bias = jnp.pad(bias, (0, cp - cout)).astype(jnp.float32)
    return w, bias


def basic_block_forward(x_nchw, params, *, stride):
    """BasicBlock forward (quantization disabled path), NCHW in / NCHW out."""
    s = int(stride)
    x = jnp.transpose(x_nchw, (0, 2, 3, 1))                 # NCHW -> NHWC
    N, H, W, Cin = x.shape
    Cout = params["w1"].shape[-1]
    Cp = _round_up(Cout, LANE)                              # lane-dense channels
    Ho = (H - 1) // s + 1                                   # 3x3/pad1/stride s
    Wo = (W - 1) // s + 1

    # --- stride-phase rearrangement of the pad-1 input (single copy, no 9x) --
    # xph[(ph*s+pw)*Hq + qh, qw, c] == xpad[qh*s + ph, qw*s + pw, c]
    Hq = Ho + 2 // s
    Wq = Wo + 2 // s
    xp = jnp.pad(x, ((0, 0), (1, Hq * s - H - 1), (1, Wq * s - W - 1), (0, 0)))
    xph = (xp.reshape(N, Hq, s, Wq, s, Cin)
             .transpose(0, 2, 4, 1, 3, 5)
             .reshape(N, s * s * Hq, Wq, Cin)
             .astype(jnp.bfloat16))

    # --- fold BN into weights (one-time), pad channels to Cp, cast to bf16 ---
    w1, b1 = _fold_bn(params["w1"], params["bn1"], Cp)                # (3,3,Cin,Cp)
    w2_raw = jnp.pad(params["w2"], ((0, 0), (0, 0), (0, Cp - Cout), (0, 0)))
    w2, b2 = _fold_bn(w2_raw, params["bn2"], Cp)                      # (3,3,Cp,Cp)
    if params["shortcut"] is not None:
        wsc_raw, bn_sc = params["shortcut"]
        wsc, bsc = _fold_bn(wsc_raw[0, 0], bn_sc, Cp)                 # (Cin,Cp)
    else:
        # Identity shortcut (stride 1, Cin == Cout): identity projection matrix.
        wsc = jnp.pad(jnp.eye(Cin, dtype=jnp.float32),
                      ((0, 0), (0, Cp - Cin))).astype(jnp.bfloat16)
        bsc = jnp.zeros((Cp,), jnp.float32)

    w1 = w1.reshape(9, Cin, Cp)
    w2 = w2.reshape(9, Cp, Cp)
    b1 = b1.reshape(1, Cp)
    bo = (b2 + bsc).reshape(1, Cp)        # bn2 bias + shortcut bias, pre-folded

    kernel = _make_block_kernel(stride=s, Ho=Ho, Wo=Wo, Hq=Hq, Cp=Cp,
                                out_dtype=jnp.float32)

    # Explicit (generation-portable) VMEM budget: double-buffered blocks + scratch.
    blk_bytes = (s * s * Hq * Wq * Cin * 2 + 9 * Cin * Cp * 2 + 9 * Cp * Cp * 2
                 + Cin * Cp * 2 + 2 * Cp * 4 + Ho * Wo * Cp * 4)
    scratch_bytes = (Ho + 2) * (Wo + 2) * Cp * 4
    vmem_limit = int(min(max(2 * blk_bytes + scratch_bytes + (4 << 20), 16 << 20),
                         64 << 20))

    full = lambda shape: pl.BlockSpec(shape, lambda n: (0,) * len(shape))
    out = pl.pallas_call(
        kernel,
        out_shape=jax.ShapeDtypeStruct((N, Ho, Wo, Cp), jnp.float32),
        grid=(N,),
        in_specs=[
            pl.BlockSpec((1, s * s * Hq, Wq, Cin), lambda n: (n, 0, 0, 0)),
            full((9, Cin, Cp)),
            full((1, Cp)),
            full((9, Cp, Cp)),
            full((Cin, Cp)),
            full((1, Cp)),
        ],
        out_specs=pl.BlockSpec((1, Ho, Wo, Cp), lambda n: (n, 0, 0, 0)),
        scratch_shapes=[pltpu.VMEM((Ho + 2, Wo + 2, Cp), jnp.float32)],
        compiler_params=pltpu.CompilerParams(
            dimension_semantics=("parallel",),
            vmem_limit_bytes=vmem_limit,
        ),
    )(xph, w1, b1, w2, wsc, bo)

    out = out[..., :Cout]                                   # drop channel padding
    return jnp.transpose(out, (0, 3, 1, 2))                 # NHWC -> NCHW


# ----------------------------- pure-JAX reference ---------------------------
def _ref_conv_bn(x, w, bn, *, stride, relu, residual=None):
    K = w.shape[0]
    pad = (K - 1) // 2
    y = jax.lax.conv_general_dilated(
        x, w, window_strides=(stride, stride),
        padding=((pad, pad), (pad, pad)),
        dimension_numbers=("NHWC", "HWIO", "NHWC"))
    gamma, beta, mean, var = bn
    scale = gamma / jnp.sqrt(var + 1e-5)
    y = y * scale + (beta - mean * scale)
    if residual is not None:
        y = y + residual
    return jnp.maximum(y, 0.0) if relu else y


def basic_block_reference(x_nchw, params, *, stride):
    x = jnp.transpose(x_nchw, (0, 2, 3, 1))
    if params["shortcut"] is not None:
        w_sc, bn_sc = params["shortcut"]
        sc = _ref_conv_bn(x, w_sc, bn_sc, stride=stride, relu=False)
    else:
        sc = x
    out = _ref_conv_bn(x, params["w1"], params["bn1"], stride=stride, relu=True)
    out = _ref_conv_bn(out, params["w2"], params["bn2"], stride=1, relu=True,
                       residual=sc)
    return jnp.transpose(out, (0, 3, 1, 2))


# --------------------------------- params -----------------------------------
def init_params(key, in_channels, out_channels, stride):
    k1, k2, k3 = jax.random.split(key, 3)

    def conv_w(k, kh, kw, cin, cout):
        fan_in = kh * kw * cin
        return jax.random.normal(k, (kh, kw, cin, cout), jnp.float32) / jnp.sqrt(fan_in)

    def bn_params(c, shift):
        idx = jnp.arange(c, dtype=jnp.float32)
        gamma = 1.0 + 0.01 * (idx + shift)
        beta = 0.02 * (idx - shift)
        mean = 0.05 * idx - 0.1
        var = 1.0 + 0.1 * idx
        return (gamma, beta, mean, var)

    params = {
        "w1": conv_w(k1, 3, 3, in_channels, out_channels),
        "bn1": bn_params(out_channels, 1.0),
        "w2": conv_w(k2, 3, 3, out_channels, out_channels),
        "bn2": bn_params(out_channels, 2.0),
    }
    if stride != 1 or in_channels != out_channels:
        params["shortcut"] = (
            conv_w(k3, 1, 1, in_channels, out_channels),
            bn_params(out_channels, 3.0),
        )
    else:
        params["shortcut"] = None
    return params


if __name__ == "__main__":
    key = jax.random.PRNGKey(0)
    kx, kp1, kp2 = jax.random.split(key, 3)

    # Small shapes: batch=2, Cin=4, 16x16 spatial.
    N, Cin, H, W = 2, 4, 16, 16
    Cout, stride = 8, 2
    x = jax.random.normal(kx, (N, Cin, H, W), jnp.float32)

    # Block 1: projection shortcut (stride 2, channel change): 4->8, 16x16->8x8
    p1 = init_params(kp1, Cin, Cout, stride)
    # Block 2: identity shortcut (stride 1, same channels):    8->8, 8x8->8x8
    p2 = init_params(kp2, Cout, Cout, 1)

    @jax.jit
    def fwd(x, p1, p2):
        y = basic_block_forward(x, p1, stride=stride)
        return basic_block_forward(y, p2, stride=1)

    out = fwd(x, p1, p2)
    jax.block_until_ready(out)

    ref = basic_block_reference(
        basic_block_reference(x, p1, stride=stride), p2, stride=1)

    assert out.shape == (N, Cout, H // stride, W // stride), out.shape
    assert bool(jnp.all(jnp.isfinite(out)))
    assert bool(jnp.all(out >= 0.0))  # final ReLU
    rel_err = float(jnp.max(jnp.abs(out - ref)) / (jnp.max(jnp.abs(ref)) + 1e-6))
    assert rel_err < 5e-2, f"mismatch vs reference: rel_err={rel_err}"
    print("KERNEL_OK")
</pallas_src>

<mosaic_0001>
module attributes {stable_mosaic.version = 11 : i64} {
  func.func @kernel(%arg0: i32, %arg1: memref<1x36x9x4xbf16, #tpu.memory_space<vmem>>, %arg2: memref<9x4x128xbf16, #tpu.memory_space<vmem>>, %arg3: memref<1x128xf32, #tpu.memory_space<vmem>>, %arg4: memref<9x128x128xbf16, #tpu.memory_space<vmem>>, %arg5: memref<4x128xbf16, #tpu.memory_space<vmem>>, %arg6: memref<1x128xf32, #tpu.memory_space<vmem>>, %arg7: memref<1x8x8x128xf32, #tpu.memory_space<vmem>>, %arg8: memref<10x10x128xf32, #tpu.memory_space<vmem>>) attributes {dimension_semantics = [#tpu.dimension_semantics<parallel>], iteration_bounds = array<i64: 2>, scalar_prefetch = 0 : i64, scratch_operands = 1 : i64, tpu.core_type = #tpu.core_type<tc>, window_params = [{transform_indices = @transform_0, window_bounds = array<i64: 1, 36, 9, 4>}, {pipeline_mode = #tpu.pipeline_mode<synchronous>, transform_indices = @transform_1, window_bounds = array<i64: 9, 4, 128>}, {pipeline_mode = #tpu.pipeline_mode<synchronous>, transform_indices = @transform_2, window_bounds = array<i64: 1, 128>}, {pipeline_mode = #tpu.pipeline_mode<synchronous>, transform_indices = @transform_3, window_bounds = array<i64: 9, 128, 128>}, {pipeline_mode = #tpu.pipeline_mode<synchronous>, transform_indices = @transform_4, window_bounds = array<i64: 4, 128>}, {pipeline_mode = #tpu.pipeline_mode<synchronous>, transform_indices = @transform_5, window_bounds = array<i64: 1, 128>}, {transform_indices = @transform_6, window_bounds = array<i64: 1, 8, 8, 128>}]} {
    %cst = arith.constant 0.000000e+00 : f32
    %0 = vector.broadcast %cst : f32 to vector<10x10x128xf32>
    %c0 = arith.constant 0 : index
    %c0_0 = arith.constant 0 : index
    %c0_1 = arith.constant 0 : index
    %1 = vector.load %arg8[%c0, %c0_0, %c0_1] : memref<10x10x128xf32, #tpu.memory_space<vmem>>, vector<10x10x128xf32>
    tpu.vector_store %arg8[%c0, %c0_0, %c0_1], %0 {strides = array<i32>} : memref<10x10x128xf32, #tpu.memory_space<vmem>>, vector<10x10x128xf32>,
    %c0_i32 = arith.constant 0 : i32
    %c8_i32 = arith.constant 8 : i32
    %2 = arith.addi %c0_i32, %c8_i32 : i32
    %c1_i32 = arith.constant 1 : i32
    scf.for %arg9 = %c0_i32 to %2 step %c1_i32  : i32 {
      %c1_i32_7 = arith.constant 1 : i32
      %4 = arith.muli %arg9, %c1_i32_7 : i32
      %c0_i32_8 = arith.constant 0 : i32
      %5 = arith.addi %c0_i32_8, %4 : i32
      %cst_9 = arith.constant 0.000000e+00 : f32
      %6 = vector.broadcast %cst_9 : f32 to vector<8x128xf32>
      %c0_i32_10 = arith.constant 0 : i32
      %7 = arith.addi %c0_i32_10, %5 : i32
      %c0_11 = arith.constant 0 : index
      %8 = arith.index_cast %7 : i32 to index
      %c0_12 = arith.constant 0 : index
      %c0_13 = arith.constant 0 : index
      %9 = vector.load %arg1[%c0_11, %8, %c0_12, %c0_13] : memref<1x36x9x4xbf16, #tpu.memory_space<vmem>>, vector<1x1x9x4xbf16>
      %10 = vector.shape_cast %9 : vector<1x1x9x4xbf16> to vector<9x4xbf16>
      %11 = vector.extract_strided_slice %10 {offsets = [0, 0], sizes = [8, 4], strides = [1, 1]} : vector<9x4xbf16> to vector<8x4xbf16>
      %c0_14 = arith.constant 0 : index
      %c0_15 = arith.constant 0 : index
      %c0_16 = arith.constant 0 : index
      %12 = vector.load %arg2[%c0_14, %c0_15, %c0_16] : memref<9x4x128xbf16, #tpu.memory_space<vmem>>, vector<1x4x128xbf16>
      %13 = vector.shape_cast %12 : vector<1x4x128xbf16> to vector<4x128xbf16>
      %cst_17 = arith.constant dense<0.000000e+00> : vector<8x128xf32>
      %14 = tpu.matmul %11, %13, %cst_17 {dimension_numbers = #tpu.dot_dimension_numbers<[1], [0], [0], [1], [0, 0, 1, 1], [], []>} : vector<8x4xbf16>, vector<4x128xbf16>, vector<8x128xf32> -> vector<8x128xf32>
      %15 = arith.addf %6, %14 : vector<8x128xf32>
      %c9_i32 = arith.constant 9 : i32
      %16 = arith.addi %c9_i32, %5 : i32
      %c0_18 = arith.constant 0 : index
      %17 = arith.index_cast %16 : i32 to index
      %c0_19 = arith.constant 0 : index
      %c0_20 = arith.constant 0 : index
      %18 = vector.load %arg1[%c0_18, %17, %c0_19, %c0_20] : memref<1x36x9x4xbf16, #tpu.memory_space<vmem>>, vector<1x1x9x4xbf16>
      %19 = vector.shape_cast %18 : vector<1x1x9x4xbf16> to vector<9x4xbf16>
      %20 = vector.extract_strided_slice %19 {offsets = [0, 0], sizes = [8, 4], strides = [1, 1]} : vector<9x4xbf16> to vector<8x4xbf16>
      %c1 = arith.constant 1 : index
      %c0_21 = arith.constant 0 : index
      %c0_22 = arith.constant 0 : index
      %21 = vector.load %arg2[%c1, %c0_21, %c0_22] : memref<9x4x128xbf16, #tpu.memory_space<vmem>>, vector<1x4x128xbf16>
      %22 = vector.shape_cast %21 : vector<1x4x128xbf16> to vector<4x128xbf16>
      %cst_23 = arith.constant dense<0.000000e+00> : vector<8x128xf32>
      %23 = tpu.matmul %20, %22, %cst_23 {dimension_numbers = #tpu.dot_dimension_numbers<[1], [0], [0], [1], [0, 0, 1, 1], [], []>} : vector<8x4xbf16>, vector<4x128xbf16>, vector<8x128xf32> -> vector<8x128xf32>
      %24 = arith.addf %15, %23 : vector<8x128xf32>
      %c0_i32_24 = arith.constant 0 : i32
      %25 = arith.addi %c0_i32_24, %5 : i32
      %c0_25 = arith.constant 0 : index
      %26 = arith.index_cast %25 : i32 to index
      %c0_26 = arith.constant 0 : index
      %c0_27 = arith.constant 0 : index
      %27 = vector.load %arg1[%c0_25, %26, %c0_26, %c0_27] : memref<1x36x9x4xbf16, #tpu.memory_space<vmem>>, vector<1x1x9x4xbf16>
      %28 = vector.shape_cast %27 : vector<1x1x9x4xbf16> to vector<9x4xbf16>
      %29 = vector.extract_strided_slice %28 {offsets = [1, 0], sizes = [8, 4], strides = [1, 1]} : vector<9x4xbf16> to vector<8x4xbf16>
      %c2 = arith.constant 2 : index
      %c0_28 = arith.constant 0 : index
      %c0_29 = arith.constant 0 : index
      %30 = vector.load %arg2[%c2, %c0_28, %c0_29] : memref<9x4x128xbf16, #tpu.memory_space<vmem>>, vector<1x4x128xbf16>
      %31 = vector.shape_cast %30 : vector<1x4x128xbf16> to vector<4x128xbf16>
      %cst_30 = arith.constant dense<0.000000e+00> : vector<8x128xf32>
      %32 = tpu.matmul %29, %31, %cst_30 {dimension_numbers = #tpu.dot_dimension_numbers<[1], [0], [0], [1], [0, 0, 1, 1], [], []>} : vector<8x4xbf16>, vector<4x128xbf16>, vector<8x128xf32> -> vector<8x128xf32>
      %33 = arith.addf %24, %32 : vector<8x128xf32>
      %c18_i32 = arith.constant 18 : i32
      %34 = arith.addi %c18_i32, %5 : i32
      %c0_31 = arith.constant 0 : index
      %35 = arith.index_cast %34 : i32 to index
      %c0_32 = arith.constant 0 : index
      %c0_33 = arith.constant 0 : index
      %36 = vector.load %arg1[%c0_31, %35, %c0_32, %c0_33] : memref<1x36x9x4xbf16, #tpu.memory_space<vmem>>, vector<1x1x9x4xbf16>
      %37 = vector.shape_cast %36 : vector<1x1x9x4xbf16> to vector<9x4xbf16>
      %38 = vector.extract_strided_slice %37 {offsets = [0, 0], sizes = [8, 4], strides = [1, 1]} : vector<9x4xbf16> to vector<8x4xbf16>
      %c3 = arith.constant 3 : index
      %c0_34 = arith.constant 0 : index
      %c0_35 = arith.constant 0 : index
      %39 = vector.load %arg2[%c3, %c0_34, %c0_35] : memref<9x4x128xbf16, #tpu.memory_space<vmem>>, vector<1x4x128xbf16>
      %40 = vector.shape_cast %39 : vector<1x4x128xbf16> to vector<4x128xbf16>
      %cst_36 = arith.constant dense<0.000000e+00> : vector<8x128xf32>
      %41 = tpu.matmul %38, %40, %cst_36 {dimension_numbers = #tpu.dot_dimension_numbers<[1], [0], [0], [1], [0, 0, 1, 1], [], []>} : vector<8x4xbf16>, vector<4x128xbf16>, vector<8x128xf32> -> vector<8x128xf32>
      %42 = arith.addf %33, %41 : vector<8x128xf32>
      %c27_i32 = arith.constant 27 : i32
      %43 = arith.addi %c27_i32, %5 : i32
      %c0_37 = arith.constant 0 : index
      %44 = arith.index_cast %43 : i32 to index
      %c0_38 = arith.constant 0 : index
      %c0_39 = arith.constant 0 : index
      %45 = vector.load %arg1[%c0_37, %44, %c0_38, %c0_39] : memref<1x36x9x4xbf16, #tpu.memory_space<vmem>>, vector<1x1x9x4xbf16>
      %46 = vector.shape_cast %45 : vector<1x1x9x4xbf16> to vector<9x4xbf16>
      %47 = vector.extract_strided_slice %46 {offsets = [0, 0], sizes = [8, 4], strides = [1, 1]} : vector<9x4xbf16> to vector<8x4xbf16>
      %c4 = arith.constant 4 : index
      %c0_40 = arith.constant 0 : index
      %c0_41 = arith.constant 0 : index
      %48 = vector.load %arg2[%c4, %c0_40, %c0_41] : memref<9x4x128xbf16, #tpu.memory_space<vmem>>, vector<1x4x128xbf16>
      %49 = vector.shape_cast %48 : vector<1x4x128xbf16> to vector<4x128xbf16>
      %cst_42 = arith.constant dense<0.000000e+00> : vector<8x128xf32>
      %50 = tpu.matmul %47, %49, %cst_42 {dimension_numbers = #tpu.dot_dimension_numbers<[1], [0], [0], [1], [0, 0, 1, 1], [], []>} : vector<8x4xbf16>, vector<4x128xbf16>, vector<8x128xf32> -> vector<8x128xf32>
      %51 = arith.addf %42, %50 : vector<8x128xf32>
      %c18_i32_43 = arith.constant 18 : i32
      %52 = arith.addi %c18_i32_43, %5 : i32
      %c0_44 = arith.constant 0 : index
      %53 = arith.index_cast %52 : i32 to index
      %c0_45 = arith.constant 0 : index
      %c0_46 = arith.constant 0 : index
      %54 = vector.load %arg1[%c0_44, %53, %c0_45, %c0_46] : memref<1x36x9x4xbf16, #tpu.memory_space<vmem>>, vector<1x1x9x4xbf16>
      %55 = vector.shape_cast %54 : vector<1x1x9x4xbf16> to vector<9x4xbf16>
      %56 = vector.extract_strided_slice %55 {offsets = [1, 0], sizes = [8, 4], strides = [1, 1]} : vector<9x4xbf16> to vector<8x4xbf16>
      %c5 = arith.constant 5 : index
      %c0_47 = arith.constant 0 : index
      %c0_48 = arith.constant 0 : index
      %57 = vector.load %arg2[%c5, %c0_47, %c0_48] : memref<9x4x128xbf16, #tpu.memory_space<vmem>>, vector<1x4x128xbf16>
      %58 = vector.shape_cast %57 : vector<1x4x128xbf16> to vector<4x128xbf16>
      %cst_49 = arith.constant dense<0.000000e+00> : vector<8x128xf32>
      %59 = tpu.matmul %56, %58, %cst_49 {dimension_numbers = #tpu.dot_dimension_numbers<[1], [0], [0], [1], [0, 0, 1, 1], [], []>} : vector<8x4xbf16>, vector<4x128xbf16>, vector<8x128xf32> -> vector<8x128xf32>
      %60 = arith.addf %51, %59 : vector<8x128xf32>
      %c1_i32_50 = arith.constant 1 : i32
      %61 = arith.addi %c1_i32_50, %5 : i32
      %c0_51 = arith.constant 0 : index
      %62 = arith.index_cast %61 : i32 to index
      %c0_52 = arith.constant 0 : index
      %c0_53 = arith.constant 0 : index
      %63 = vector.load %arg1[%c0_51, %62, %c0_52, %c0_53] : memref<1x36x9x4xbf16, #tpu.memory_space<vmem>>, vector<1x1x9x4xbf16>
      %64 = vector.shape_cast %63 : vector<1x1x9x4xbf16> to vector<9x4xbf16>
      %65 = vector.extract_strided_slice %64 {offsets = [0, 0], sizes = [8, 4], strides = [1, 1]} : vector<9x4xbf16> to vector<8x4xbf16>
      %c6 = arith.constant 6 : index
      %c0_54 = arith.constant 0 : index
      %c0_55 = arith.constant 0 : index
      %66 = vector.load %arg2[%c6, %c0_54, %c0_55] : memref<9x4x128xbf16, #tpu.memory_space<vmem>>, vector<1x4x128xbf16>
      %67 = vector.shape_cast %66 : vector<1x4x128xbf16> to vector<4x128xbf16>
      %cst_56 = arith.constant dense<0.000000e+00> : vector<8x128xf32>
      %68 = tpu.matmul %65, %67, %cst_56 {dimension_numbers = #tpu.dot_dimension_numbers<[1], [0], [0], [1], [0, 0, 1, 1], [], []>} : vector<8x4xbf16>, vector<4x128xbf16>, vector<8x128xf32> -> vector<8x128xf32>
      %69 = arith.addf %60, %68 : vector<8x128xf32>
      %c10_i32 = arith.constant 10 : i32
      %70 = arith.addi %c10_i32, %5 : i32
      %c0_57 = arith.constant 0 : index
      %71 = arith.index_cast %70 : i32 to index
      %c0_58 = arith.constant 0 : index
      %c0_59 = arith.constant 0 : index
      %72 = vector.load %arg1[%c0_57, %71, %c0_58, %c0_59] : memref<1x36x9x4xbf16, #tpu.memory_space<vmem>>, vector<1x1x9x4xbf16>
      %73 = vector.shape_cast %72 : vector<1x1x9x4xbf16> to vector<9x4xbf16>
      %74 = vector.extract_strided_slice %73 {offsets = [0, 0], sizes = [8, 4], strides = [1, 1]} : vector<9x4xbf16> to vector<8x4xbf16>
      %c7 = arith.constant 7 : index
      %c0_60 = arith.constant 0 : index
      %c0_61 = arith.constant 0 : index
      %75 = vector.load %arg2[%c7, %c0_60, %c0_61] : memref<9x4x128xbf16, #tpu.memory_space<vmem>>, vector<1x4x128xbf16>
      %76 = vector.shape_cast %75 : vector<1x4x128xbf16> to vector<4x128xbf16>
      %cst_62 = arith.constant dense<0.000000e+00> : vector<8x128xf32>
      %77 = tpu.matmul %74, %76, %cst_62 {dimension_numbers = #tpu.dot_dimension_numbers<[1], [0], [0], [1], [0, 0, 1, 1], [], []>} : vector<8x4xbf16>, vector<4x128xbf16>, vector<8x128xf32> -> vector<8x128xf32>
      %78 = arith.addf %69, %77 : vector<8x128xf32>
      %c1_i32_63 = arith.constant 1 : i32
      %79 = arith.addi %c1_i32_63, %5 : i32
      %c0_64 = arith.constant 0 : index
      %80 = arith.index_cast %79 : i32 to index
      %c0_65 = arith.constant 0 : index
      %c0_66 = arith.constant 0 : index
      %81 = vector.load %arg1[%c0_64, %80, %c0_65, %c0_66] : memref<1x36x9x4xbf16, #tpu.memory_space<vmem>>, vector<1x1x9x4xbf16>
      %82 = vector.shape_cast %81 : vector<1x1x9x4xbf16> to vector<9x4xbf16>
      %83 = vector.extract_strided_slice %82 {offsets = [1, 0], sizes = [8, 4], strides = [1, 1]} : vector<9x4xbf16> to vector<8x4xbf16>
      %c8 = arith.constant 8 : index
      %c0_67 = arith.constant 0 : index
      %c0_68 = arith.constant 0 : index
      %84 = vector.load %arg2[%c8, %c0_67, %c0_68] : memref<9x4x128xbf16, #tpu.memory_space<vmem>>, vector<1x4x128xbf16>
      %85 = vector.shape_cast %84 : vector<1x4x128xbf16> to vector<4x128xbf16>
      %cst_69 = arith.constant dense<0.000000e+00> : vector<8x128xf32>
      %86 = tpu.matmul %83, %85, %cst_69 {dimension_numbers = #tpu.dot_dimension_numbers<[1], [0], [0], [1], [0, 0, 1, 1], [], []>} : vector<8x4xbf16>, vector<4x128xbf16>, vector<8x128xf32> -> vector<8x128xf32>
      %87 = arith.addf %78, %86 : vector<8x128xf32>
      %c0_70 = arith.constant 0 : index
      %c0_71 = arith.constant 0 : index
      %88 = vector.load %arg3[%c0_70, %c0_71] : memref<1x128xf32, #tpu.memory_space<vmem>>, vector<1x128xf32>
      %89 = vector.broadcast %88 : vector<1x128xf32> to vector<8x128xf32>
      %90 = arith.addf %87, %89 : vector<8x128xf32>
      %cst_72 = arith.constant 0.000000e+00 : f32
      %91 = vector.broadcast %cst_72 : f32 to vector<8x128xf32>
      %92 = arith.maximumf %90, %91 : vector<8x128xf32>
      %c1_i32_73 = arith.constant 1 : i32
      %93 = arith.addi %c1_i32_73, %5 : i32
      %94 = arith.index_cast %93 : i32 to index
      %c1_74 = arith.constant 1 : index
      %c0_75 = arith.constant 0 : index
      %95 = vector.load %arg8[%94, %c1_74, %c0_75] : memref<10x10x128xf32, #tpu.memory_space<vmem>>, vector<1x8x128xf32>
      %96 = vector.shape_cast %95 : vector<1x8x128xf32> to vector<8x128xf32>
      %97 = vector.shape_cast %92 : vector<8x128xf32> to vector<1x8x128xf32>
      tpu.vector_store %arg8[%94, %c1_74, %c0_75], %97 {strides = array<i32>} : memref<10x10x128xf32, #tpu.memory_space<vmem>>, vector<1x8x128xf32>,
    }
    %c8_i32_2 = arith.constant 8 : i32
    %c0_i32_3 = arith.constant 0 : i32
    %c8_i32_4 = arith.constant 8 : i32
    %3 = arith.addi %c0_i32_3, %c8_i32_4 : i32
    %c1_i32_5 = arith.constant 1 : i32
    scf.for %arg9 = %c0_i32_3 to %3 step %c1_i32_5  : i32 {
      %c1_i32_7 = arith.constant 1 : i32
      %4 = arith.muli %arg9, %c1_i32_7 : i32
      %c0_i32_8 = arith.constant 0 : i32
      %5 = arith.addi %c0_i32_8, %4 : i32
      %cst_9 = arith.constant 0.000000e+00 : f32
      %6 = vector.broadcast %cst_9 : f32 to vector<8x128xf32>
      %c0_i32_10 = arith.constant 0 : i32
      %7 = arith.addi %5, %c0_i32_10 : i32
      %8 = arith.index_cast %7 : i32 to index
      %c0_11 = arith.constant 0 : index
      %c0_12 = arith.constant 0 : index
      %9 = vector.load %arg8[%8, %c0_11, %c0_12] : memref<10x10x128xf32, #tpu.memory_space<vmem>>, vector<1x10x128xf32>
      %10 = vector.shape_cast %9 : vector<1x10x128xf32> to vector<10x128xf32>
      %11 = vector.extract_strided_slice %10 {offsets = [0, 0], sizes = [8, 128], strides = [1, 1]} : vector<10x128xf32> to vector<8x128xf32>
      %12 = arith.truncf %11 : vector<8x128xf32> to vector<8x128xbf16>
      %c0_13 = arith.constant 0 : index
      %c0_14 = arith.constant 0 : index
      %c0_15 = arith.constant 0 : index
      %13 = vector.load %arg4[%c0_13, %c0_14, %c0_15] : memref<9x128x128xbf16, #tpu.memory_space<vmem>>, vector<1x128x128xbf16>
      %14 = vector.shape_cast %13 : vector<1x128x128xbf16> to vector<128x128xbf16>
      %cst_16 = arith.constant dense<0.000000e+00> : vector<8x128xf32>
      %15 = tpu.matmul %12, %14, %cst_16 {dimension_numbers = #tpu.dot_dimension_numbers<[1], [0], [0], [1], [0, 0, 1, 1], [], []>} : vector<8x128xbf16>, vector<128x128xbf16>, vector<8x128xf32> -> vector<8x128xf32>
      %16 = arith.addf %6, %15 : vector<8x128xf32>
      %c0_i32_17 = arith.constant 0 : i32
      %17 = arith.addi %5, %c0_i32_17 : i32
      %18 = arith.index_cast %17 : i32 to index
      %c0_18 = arith.constant 0 : index
      %c0_19 = arith.constant 0 : index
      %19 = vector.load %arg8[%18, %c0_18, %c0_19] : memref<10x10x128xf32, #tpu.memory_space<vmem>>, vector<1x10x128xf32>
      %20 = vector.shape_cast %19 : vector<1x10x128xf32> to vector<10x128xf32>
      %21 = vector.extract_strided_slice %20 {offsets = [1, 0], sizes = [8, 128], strides = [1, 1]} : vector<10x128xf32> to vector<8x128xf32>
      %22 = arith.truncf %21 : vector<8x128xf32> to vector<8x128xbf16>
      %c1 = arith.constant 1 : index
      %c0_20 = arith.constant 0 : index
      %c0_21 = arith.constant 0 : index
      %23 = vector.load %arg4[%c1, %c0_20, %c0_21] : memref<9x128x128xbf16, #tpu.memory_space<vmem>>, vector<1x128x128xbf16>
      %24 = vector.shape_cast %23 : vector<1x128x128xbf16> to vector<128x128xbf16>
      %cst_22 = arith.constant dense<0.000000e+00> : vector<8x128xf32>
      %25 = tpu.matmul %22, %24, %cst_22 {dimension_numbers = #tpu.dot_dimension_numbers<[1], [0], [0], [1], [0, 0, 1, 1], [], []>} : vector<8x128xbf16>, vector<128x128xbf16>, vector<8x128xf32> -> vector<8x128xf32>
      %26 = arith.addf %16, %25 : vector<8x128xf32>
      %c0_i32_23 = arith.constant 0 : i32
      %27 = arith.addi %5, %c0_i32_23 : i32
      %28 = arith.index_cast %27 : i32 to index
      %c0_24 = arith.constant 0 : index
      %c0_25 = arith.constant 0 : index
      %29 = vector.load %arg8[%28, %c0_24, %c0_25] : memref<10x10x128xf32, #tpu.memory_space<vmem>>, vector<1x10x128xf32>
      %30 = vector.shape_cast %29 : vector<1x10x128xf32> to vector<10x128xf32>
      %31 = vector.extract_strided_slice %30 {offsets = [2, 0], sizes = [8, 128], strides = [1, 1]} : vector<10x128xf32> to vector<8x128xf32>
      %32 = arith.truncf %31 : vector<8x128xf32> to vector<8x128xbf16>
      %c2 = arith.constant 2 : index
      %c0_26 = arith.constant 0 : index
      %c0_27 = arith.constant 0 : index
      %33 = vector.load %arg4[%c2, %c0_26, %c0_27] : memref<9x128x128xbf16, #tpu.memory_space<vmem>>, vector<1x128x128xbf16>
      %34 = vector.shape_cast %33 : vector<1x128x128xbf16> to vector<128x128xbf16>
      %cst_28 = arith.constant dense<0.000000e+00> : vector<8x128xf32>
      %35 = tpu.matmul %32, %34, %cst_28 {dimension_numbers = #tpu.dot_dimension_numbers<[1], [0], [0], [1], [0, 0, 1, 1], [], []>} : vector<8x128xbf16>, vector<128x128xbf16>, vector<8x128xf32> -> vector<8x128xf32>
      %36 = arith.addf %26, %35 : vector<8x128xf32>
      %c1_i32_29 = arith.constant 1 : i32
      %37 = arith.addi %5, %c1_i32_29 : i32
      %38 = arith.index_cast %37 : i32 to index
      %c0_30 = arith.constant 0 : index
      %c0_31 = arith.constant 0 : index
      %39 = vector.load %arg8[%38, %c0_30, %c0_31] : memref<10x10x128xf32, #tpu.memory_space<vmem>>, vector<1x10x128xf32>
      %40 = vector.shape_cast %39 : vector<1x10x128xf32> to vector<10x128xf32>
      %41 = vector.extract_strided_slice %40 {offsets = [0, 0], sizes = [8, 128], strides = [1, 1]} : vector<10x128xf32> to vector<8x128xf32>
      %42 = arith.truncf %41 : vector<8x128xf32> to vector<8x128xbf16>
      %c3 = arith.constant 3 : index
      %c0_32 = arith.constant 0 : index
      %c0_33 = arith.constant 0 : index
      %43 = vector.load %arg4[%c3, %c0_32, %c0_33] : memref<9x128x128xbf16, #tpu.memory_space<vmem>>, vector<1x128x128xbf16>
      %44 = vector.shape_cast %43 : vector<1x128x128xbf16> to vector<128x128xbf16>
      %cst_34 = arith.constant dense<0.000000e+00> : vector<8x128xf32>
      %45 = tpu.matmul %42, %44, %cst_34 {dimension_numbers = #tpu.dot_dimension_numbers<[1], [0], [0], [1], [0, 0, 1, 1], [], []>} : vector<8x128xbf16>, vector<128x128xbf16>, vector<8x128xf32> -> vector<8x128xf32>
      %46 = arith.addf %36, %45 : vector<8x128xf32>
      %c1_i32_35 = arith.constant 1 : i32
      %47 = arith.addi %5, %c1_i32_35 : i32
      %48 = arith.index_cast %47 : i32 to index
      %c0_36 = arith.constant 0 : index
      %c0_37 = arith.constant 0 : index
      %49 = vector.load %arg8[%48, %c0_36, %c0_37] : memref<10x10x128xf32, #tpu.memory_space<vmem>>, vector<1x10x128xf32>
      %50 = vector.shape_cast %49 : vector<1x10x128xf32> to vector<10x128xf32>
      %51 = vector.extract_strided_slice %50 {offsets = [1, 0], sizes = [8, 128], strides = [1, 1]} : vector<10x128xf32> to vector<8x128xf32>
      %52 = arith.truncf %51 : vector<8x128xf32> to vector<8x128xbf16>
      %c4 = arith.constant 4 : index
      %c0_38 = arith.constant 0 : index
      %c0_39 = arith.constant 0 : index
      %53 = vector.load %arg4[%c4, %c0_38, %c0_39] : memref<9x128x128xbf16, #tpu.memory_space<vmem>>, vector<1x128x128xbf16>
      %54 = vector.shape_cast %53 : vector<1x128x128xbf16> to vector<128x128xbf16>
      %cst_40 = arith.constant dense<0.000000e+00> : vector<8x128xf32>
      %55 = tpu.matmul %52, %54, %cst_40 {dimension_numbers = #tpu.dot_dimension_numbers<[1], [0], [0], [1], [0, 0, 1, 1], [], []>} : vector<8x128xbf16>, vector<128x128xbf16>, vector<8x128xf32> -> vector<8x128xf32>
      %56 = arith.addf %46, %55 : vector<8x128xf32>
      %c1_i32_41 = arith.constant 1 : i32
      %57 = arith.addi %5, %c1_i32_41 : i32
      %58 = arith.index_cast %57 : i32 to index
      %c0_42 = arith.constant 0 : index
      %c0_43 = arith.constant 0 : index
      %59 = vector.load %arg8[%58, %c0_42, %c0_43] : memref<10x10x128xf32, #tpu.memory_space<vmem>>, vector<1x10x128xf32>
      %60 = vector.shape_cast %59 : vector<1x10x128xf32> to vector<10x128xf32>
      %61 = vector.extract_strided_slice %60 {offsets = [2, 0], sizes = [8, 128], strides = [1, 1]} : vector<10x128xf32> to vector<8x128xf32>
      %62 = arith.truncf %61 : vector<8x128xf32> to vector<8x128xbf16>
      %c5 = arith.constant 5 : index
      %c0_44 = arith.constant 0 : index
      %c0_45 = arith.constant 0 : index
      %63 = vector.load %arg4[%c5, %c0_44, %c0_45] : memref<9x128x128xbf16, #tpu.memory_space<vmem>>, vector<1x128x128xbf16>
      %64 = vector.shape_cast %63 : vector<1x128x128xbf16> to vector<128x128xbf16>
      %cst_46 = arith.constant dense<0.000000e+00> : vector<8x128xf32>
      %65 = tpu.matmul %62, %64, %cst_46 {dimension_numbers = #tpu.dot_dimension_numbers<[1], [0], [0], [1], [0, 0, 1, 1], [], []>} : vector<8x128xbf16>, vector<128x128xbf16>, vector<8x128xf32> -> vector<8x128xf32>
      %66 = arith.addf %56, %65 : vector<8x128xf32>
      %c2_i32 = arith.constant 2 : i32
      %67 = arith.addi %5, %c2_i32 : i32
      %68 = arith.index_cast %67 : i32 to index
      %c0_47 = arith.constant 0 : index
      %c0_48 = arith.constant 0 : index
      %69 = vector.load %arg8[%68, %c0_47, %c0_48] : memref<10x10x128xf32, #tpu.memory_space<vmem>>, vector<1x10x128xf32>
      %70 = vector.shape_cast %69 : vector<1x10x128xf32> to vector<10x128xf32>
      %71 = vector.extract_strided_slice %70 {offsets = [0, 0], sizes = [8, 128], strides = [1, 1]} : vector<10x128xf32> to vector<8x128xf32>
      %72 = arith.truncf %71 : vector<8x128xf32> to vector<8x128xbf16>
      %c6 = arith.constant 6 : index
      %c0_49 = arith.constant 0 : index
      %c0_50 = arith.constant 0 : index
      %73 = vector.load %arg4[%c6, %c0_49, %c0_50] : memref<9x128x128xbf16, #tpu.memory_space<vmem>>, vector<1x128x128xbf16>
      %74 = vector.shape_cast %73 : vector<1x128x128xbf16> to vector<128x128xbf16>
      %cst_51 = arith.constant dense<0.000000e+00> : vector<8x128xf32>
      %75 = tpu.matmul %72, %74, %cst_51 {dimension_numbers = #tpu.dot_dimension_numbers<[1], [0], [0], [1], [0, 0, 1, 1], [], []>} : vector<8x128xbf16>, vector<128x128xbf16>, vector<8x128xf32> -> vector<8x128xf32>
      %76 = arith.addf %66, %75 : vector<8x128xf32>
      %c2_i32_52 = arith.constant 2 : i32
      %77 = arith.addi %5, %c2_i32_52 : i32
      %78 = arith.index_cast %77 : i32 to index
      %c0_53 = arith.constant 0 : index
      %c0_54 = arith.constant 0 : index
      %79 = vector.load %arg8[%78, %c0_53, %c0_54] : memref<10x10x128xf32, #tpu.memory_space<vmem>>, vector<1x10x128xf32>
      %80 = vector.shape_cast %79 : vector<1x10x128xf32> to vector<10x128xf32>
      %81 = vector.extract_strided_slice %80 {offsets = [1, 0], sizes = [8, 128], strides = [1, 1]} : vector<10x128xf32> to vector<8x128xf32>
      %82 = arith.truncf %81 : vector<8x128xf32> to vector<8x128xbf16>
      %c7 = arith.constant 7 : index
      %c0_55 = arith.constant 0 : index
      %c0_56 = arith.constant 0 : index
      %83 = vector.load %arg4[%c7, %c0_55, %c0_56] : memref<9x128x128xbf16, #tpu.memory_space<vmem>>, vector<1x128x128xbf16>
      %84 = vector.shape_cast %83 : vector<1x128x128xbf16> to vector<128x128xbf16>
      %cst_57 = arith.constant dense<0.000000e+00> : vector<8x128xf32>
      %85 = tpu.matmul %82, %84, %cst_57 {dimension_numbers = #tpu.dot_dimension_numbers<[1], [0], [0], [1], [0, 0, 1, 1], [], []>} : vector<8x128xbf16>, vector<128x128xbf16>, vector<8x128xf32> -> vector<8x128xf32>
      %86 = arith.addf %76, %85 : vector<8x128xf32>
      %c2_i32_58 = arith.constant 2 : i32
      %87 = arith.addi %5, %c2_i32_58 : i32
      %88 = arith.index_cast %87 : i32 to index
      %c0_59 = arith.constant 0 : index
      %c0_60 = arith.constant 0 : index
      %89 = vector.load %arg8[%88, %c0_59, %c0_60] : memref<10x10x128xf32, #tpu.memory_space<vmem>>, vector<1x10x128xf32>
      %90 = vector.shape_cast %89 : vector<1x10x128xf32> to vector<10x128xf32>
      %91 = vector.extract_strided_slice %90 {offsets = [2, 0], sizes = [8, 128], strides = [1, 1]} : vector<10x128xf32> to vector<8x128xf32>
      %92 = arith.truncf %91 : vector<8x128xf32> to vector<8x128xbf16>
      %c8 = arith.constant 8 : index
      %c0_61 = arith.constant 0 : index
      %c0_62 = arith.constant 0 : index
      %93 = vector.load %arg4[%c8, %c0_61, %c0_62] : memref<9x128x128xbf16, #tpu.memory_space<vmem>>, vector<1x128x128xbf16>
      %94 = vector.shape_cast %93 : vector<1x128x128xbf16> to vector<128x128xbf16>
      %cst_63 = arith.constant dense<0.000000e+00> : vector<8x128xf32>
      %95 = tpu.matmul %92, %94, %cst_63 {dimension_numbers = #tpu.dot_dimension_numbers<[1], [0], [0], [1], [0, 0, 1, 1], [], []>} : vector<8x128xbf16>, vector<128x128xbf16>, vector<8x128xf32> -> vector<8x128xf32>
      %96 = arith.addf %86, %95 : vector<8x128xf32>
      %c27_i32 = arith.constant 27 : i32
      %97 = arith.addi %c27_i32, %5 : i32
      %c0_64 = arith.constant 0 : index
      %98 = arith.index_cast %97 : i32 to index
      %c0_65 = arith.constant 0 : index
      %c0_66 = arith.constant 0 : index
      %99 = vector.load %arg1[%c0_64, %98, %c0_65, %c0_66] : memref<1x36x9x4xbf16, #tpu.memory_space<vmem>>, vector<1x1x9x4xbf16>
      %100 = vector.shape_cast %99 : vector<1x1x9x4xbf16> to vector<9x4xbf16>
      %101 = vector.extract_strided_slice %100 {offsets = [0, 0], sizes = [8, 4], strides = [1, 1]} : vector<9x4xbf16> to vector<8x4xbf16>
      %c0_67 = arith.constant 0 : index
      %c0_68 = arith.constant 0 : index
      %102 = vector.load %arg5[%c0_67, %c0_68] : memref<4x128xbf16, #tpu.memory_space<vmem>>, vector<4x128xbf16>
      %cst_69 = arith.constant dense<0.000000e+00> : vector<8x128xf32>
      %103 = tpu.matmul %101, %102, %cst_69 {dimension_numbers = #tpu.dot_dimension_numbers<[1], [0], [0], [1], [0, 0, 1, 1], [], []>} : vector<8x4xbf16>, vector<4x128xbf16>, vector<8x128xf32> -> vector<8x128xf32>
      %104 = arith.addf %96, %103 : vector<8x128xf32>
      %c0_70 = arith.constant 0 : index
      %c0_71 = arith.constant 0 : index
      %105 = vector.load %arg6[%c0_70, %c0_71] : memref<1x128xf32, #tpu.memory_space<vmem>>, vector<1x128xf32>
      %106 = vector.broadcast %105 : vector<1x128xf32> to vector<8x128xf32>
      %107 = arith.addf %104, %106 : vector<8x128xf32>
      %cst_72 = arith.constant 0.000000e+00 : f32
      %108 = vector.broadcast %cst_72 : f32 to vector<8x128xf32>
      %109 = arith.maximumf %107, %108 : vector<8x128xf32>
      %c0_73 = arith.constant 0 : index
      %110 = arith.index_cast %5 : i32 to index
      %c0_74 = arith.constant 0 : index
      %c0_75 = arith.constant 0 : index
      %111 = vector.load %arg7[%c0_73, %110, %c0_74, %c0_75] : memref<1x8x8x128xf32, #tpu.memory_space<vmem>>, vector<1x1x8x128xf32>
      %112 = vector.shape_cast %111 : vector<1x1x8x128xf32> to vector<8x128xf32>
      %113 = vector.shape_cast %109 : vector<8x128xf32> to vector<1x1x8x128xf32>
      tpu.vector_store %arg7[%c0_73, %110, %c0_74, %c0_75], %113 {strides = array<i32>} : memref<1x8x8x128xf32, #tpu.memory_space<vmem>>, vector<1x1x8x128xf32>,
    }
    %c8_i32_6 = arith.constant 8 : i32
    return
  }
  func.func @transform_0(%arg0: i32) -> (i32, i32, i32, i32) {
    %c0_i32 = arith.constant 0 : i32
    %c0_i32_0 = arith.constant 0 : i32
    %c0_i32_1 = arith.constant 0 : i32
    %c0_i32_2 = arith.constant 0 : i32
    return %arg0, %c0_i32, %c0_i32_0, %c0_i32_1 : i32, i32, i32, i32
  }
  func.func @transform_1(%arg0: i32) -> (i32, i32, i32) {
    %c0_i32 = arith.constant 0 : i32
    %c0_i32_0 = arith.constant 0 : i32
    %c0_i32_1 = arith.constant 0 : i32
    %c0_i32_2 = arith.constant 0 : i32
    return %c0_i32, %c0_i32_0, %c0_i32_1 : i32, i32, i32
  }
  func.func @transform_2(%arg0: i32) -> (i32, i32) {
    %c0_i32 = arith.constant 0 : i32
    %c0_i32_0 = arith.constant 0 : i32
    %c0_i32_1 = arith.constant 0 : i32
    return %c0_i32, %c0_i32_0 : i32, i32
  }
  func.func @transform_3(%arg0: i32) -> (i32, i32, i32) {
    %c0_i32 = arith.constant 0 : i32
    %c0_i32_0 = arith.constant 0 : i32
    %c0_i32_1 = arith.constant 0 : i32
    %c0_i32_2 = arith.constant 0 : i32
    return %c0_i32, %c0_i32_0, %c0_i32_1 : i32, i32, i32
  }
  func.func @transform_4(%arg0: i32) -> (i32, i32) {
    %c0_i32 = arith.constant 0 : i32
    %c0_i32_0 = arith.constant 0 : i32
    %c0_i32_1 = arith.constant 0 : i32
    return %c0_i32, %c0_i32_0 : i32, i32
  }
  func.func @transform_5(%arg0: i32) -> (i32, i32) {
    %c0_i32 = arith.constant 0 : i32
    %c0_i32_0 = arith.constant 0 : i32
    %c0_i32_1 = arith.constant 0 : i32
    return %c0_i32, %c0_i32_0 : i32, i32
  }
  func.func @transform_6(%arg0: i32) -> (i32, i32, i32, i32) {
    %c0_i32 = arith.constant 0 : i32
    %c0_i32_0 = arith.constant 0 : i32
    %c0_i32_1 = arith.constant 0 : i32
    %c0_i32_2 = arith.constant 0 : i32
    return %arg0, %c0_i32, %c0_i32_0, %c0_i32_1 : i32, i32, i32, i32
  }
}

module attributes {stable_mosaic.version = 11 : i64} {
  func.func @kernel(%arg0: i32, %arg1: memref<1x10x10x8xbf16, #tpu.memory_space<vmem>>, %arg2: memref<9x8x128xbf16, #tpu.memory_space<vmem>>, %arg3: memref<1x128xf32, #tpu.memory_space<vmem>>, %arg4: memref<9x128x128xbf16, #tpu.memory_space<vmem>>, %arg5: memref<8x128xbf16, #tpu.memory_space<vmem>>, %arg6: memref<1x128xf32, #tpu.memory_space<vmem>>, %arg7: memref<1x8x8x128xf32, #tpu.memory_space<vmem>>, %arg8: memref<10x10x128xf32, #tpu.memory_space<vmem>>) attributes {dimension_semantics = [#tpu.dimension_semantics<parallel>], iteration_bounds = array<i64: 2>, scalar_prefetch = 0 : i64, scratch_operands = 1 : i64, tpu.core_type = #tpu.core_type<tc>, window_params = [{transform_indices = @transform_0, window_bounds = array<i64: 1, 10, 10, 8>}, {pipeline_mode = #tpu.pipeline_mode<synchronous>, transform_indices = @transform_1, window_bounds = array<i64: 9, 8, 128>}, {pipeline_mode = #tpu.pipeline_mode<synchronous>, transform_indices = @transform_2, window_bounds = array<i64: 1, 128>}, {pipeline_mode = #tpu.pipeline_mode<synchronous>, transform_indices = @transform_3, window_bounds = array<i64: 9, 128, 128>}, {pipeline_mode = #tpu.pipeline_mode<synchronous>, transform_indices = @transform_4, window_bounds = array<i64: 8, 128>}, {pipeline_mode = #tpu.pipeline_mode<synchronous>, transform_indices = @transform_5, window_bounds = array<i64: 1, 128>}, {transform_indices = @transform_6, window_bounds = array<i64: 1, 8, 8, 128>}]} {
    %cst = arith.constant 0.000000e+00 : f32
    %0 = vector.broadcast %cst : f32 to vector<10x10x128xf32>
    %c0 = arith.constant 0 : index
    %c0_0 = arith.constant 0 : index
    %c0_1 = arith.constant 0 : index
    %1 = vector.load %arg8[%c0, %c0_0, %c0_1] : memref<10x10x128xf32, #tpu.memory_space<vmem>>, vector<10x10x128xf32>
    tpu.vector_store %arg8[%c0, %c0_0, %c0_1], %0 {strides = array<i32>} : memref<10x10x128xf32, #tpu.memory_space<vmem>>, vector<10x10x128xf32>,
    %c0_i32 = arith.constant 0 : i32
    %c8_i32 = arith.constant 8 : i32
    %2 = arith.addi %c0_i32, %c8_i32 : i32
    %c1_i32 = arith.constant 1 : i32
    scf.for %arg9 = %c0_i32 to %2 step %c1_i32  : i32 {
      %c1_i32_7 = arith.constant 1 : i32
      %4 = arith.muli %arg9, %c1_i32_7 : i32
      %c0_i32_8 = arith.constant 0 : i32
      %5 = arith.addi %c0_i32_8, %4 : i32
      %cst_9 = arith.constant 0.000000e+00 : f32
      %6 = vector.broadcast %cst_9 : f32 to vector<8x128xf32>
      %c0_i32_10 = arith.constant 0 : i32
      %7 = arith.addi %c0_i32_10, %5 : i32
      %c0_11 = arith.constant 0 : index
      %8 = arith.index_cast %7 : i32 to index
      %c0_12 = arith.constant 0 : index
      %c0_13 = arith.constant 0 : index
      %9 = vector.load %arg1[%c0_11, %8, %c0_12, %c0_13] : memref<1x10x10x8xbf16, #tpu.memory_space<vmem>>, vector<1x1x10x8xbf16>
      %10 = vector.shape_cast %9 : vector<1x1x10x8xbf16> to vector<10x8xbf16>
      %11 = vector.extract_strided_slice %10 {offsets = [0, 0], sizes = [8, 8], strides = [1, 1]} : vector<10x8xbf16> to vector<8x8xbf16>
      %c0_14 = arith.constant 0 : index
      %c0_15 = arith.constant 0 : index
      %c0_16 = arith.constant 0 : index
      %12 = vector.load %arg2[%c0_14, %c0_15, %c0_16] : memref<9x8x128xbf16, #tpu.memory_space<vmem>>, vector<1x8x128xbf16>
      %13 = vector.shape_cast %12 : vector<1x8x128xbf16> to vector<8x128xbf16>
      %cst_17 = arith.constant dense<0.000000e+00> : vector<8x128xf32>
      %14 = tpu.matmul %11, %13, %cst_17 {dimension_numbers = #tpu.dot_dimension_numbers<[1], [0], [0], [1], [0, 0, 1, 1], [], []>} : vector<8x8xbf16>, vector<8x128xbf16>, vector<8x128xf32> -> vector<8x128xf32>
      %15 = arith.addf %6, %14 : vector<8x128xf32>
      %c0_i32_18 = arith.constant 0 : i32
      %16 = arith.addi %c0_i32_18, %5 : i32
      %c0_19 = arith.constant 0 : index
      %17 = arith.index_cast %16 : i32 to index
      %c0_20 = arith.constant 0 : index
      %c0_21 = arith.constant 0 : index
      %18 = vector.load %arg1[%c0_19, %17, %c0_20, %c0_21] : memref<1x10x10x8xbf16, #tpu.memory_space<vmem>>, vector<1x1x10x8xbf16>
      %19 = vector.shape_cast %18 : vector<1x1x10x8xbf16> to vector<10x8xbf16>
      %20 = vector.extract_strided_slice %19 {offsets = [1, 0], sizes = [8, 8], strides = [1, 1]} : vector<10x8xbf16> to vector<8x8xbf16>
      %c1 = arith.constant 1 : index
      %c0_22 = arith.constant 0 : index
      %c0_23 = arith.constant 0 : index
      %21 = vector.load %arg2[%c1, %c0_22, %c0_23] : memref<9x8x128xbf16, #tpu.memory_space<vmem>>, vector<1x8x128xbf16>
      %22 = vector.shape_cast %21 : vector<1x8x128xbf16> to vector<8x128xbf16>
      %cst_24 = arith.constant dense<0.000000e+00> : vector<8x128xf32>
      %23 = tpu.matmul %20, %22, %cst_24 {dimension_numbers = #tpu.dot_dimension_numbers<[1], [0], [0], [1], [0, 0, 1, 1], [], []>} : vector<8x8xbf16>, vector<8x128xbf16>, vector<8x128xf32> -> vector<8x128xf32>
      %24 = arith.addf %15, %23 : vector<8x128xf32>
      %c0_i32_25 = arith.constant 0 : i32
      %25 = arith.addi %c0_i32_25, %5 : i32
      %c0_26 = arith.constant 0 : index
      %26 = arith.index_cast %25 : i32 to index
      %c0_27 = arith.constant 0 : index
      %c0_28 = arith.constant 0 : index
      %27 = vector.load %arg1[%c0_26, %26, %c0_27, %c0_28] : memref<1x10x10x8xbf16, #tpu.memory_space<vmem>>, vector<1x1x10x8xbf16>
      %28 = vector.shape_cast %27 : vector<1x1x10x8xbf16> to vector<10x8xbf16>
      %29 = vector.extract_strided_slice %28 {offsets = [2, 0], sizes = [8, 8], strides = [1, 1]} : vector<10x8xbf16> to vector<8x8xbf16>
      %c2 = arith.constant 2 : index
      %c0_29 = arith.constant 0 : index
      %c0_30 = arith.constant 0 : index
      %30 = vector.load %arg2[%c2, %c0_29, %c0_30] : memref<9x8x128xbf16, #tpu.memory_space<vmem>>, vector<1x8x128xbf16>
      %31 = vector.shape_cast %30 : vector<1x8x128xbf16> to vector<8x128xbf16>
      %cst_31 = arith.constant dense<0.000000e+00> : vector<8x128xf32>
      %32 = tpu.matmul %29, %31, %cst_31 {dimension_numbers = #tpu.dot_dimension_numbers<[1], [0], [0], [1], [0, 0, 1, 1], [], []>} : vector<8x8xbf16>, vector<8x128xbf16>, vector<8x128xf32> -> vector<8x128xf32>
      %33 = arith.addf %24, %32 : vector<8x128xf32>
      %c1_i32_32 = arith.constant 1 : i32
      %34 = arith.addi %c1_i32_32, %5 : i32
      %c0_33 = arith.constant 0 : index
      %35 = arith.index_cast %34 : i32 to index
      %c0_34 = arith.constant 0 : index
      %c0_35 = arith.constant 0 : index
      %36 = vector.load %arg1[%c0_33, %35, %c0_34, %c0_35] : memref<1x10x10x8xbf16, #tpu.memory_space<vmem>>, vector<1x1x10x8xbf16>
      %37 = vector.shape_cast %36 : vector<1x1x10x8xbf16> to vector<10x8xbf16>
      %38 = vector.extract_strided_slice %37 {offsets = [0, 0], sizes = [8, 8], strides = [1, 1]} : vector<10x8xbf16> to vector<8x8xbf16>
      %c3 = arith.constant 3 : index
      %c0_36 = arith.constant 0 : index
      %c0_37 = arith.constant 0 : index
      %39 = vector.load %arg2[%c3, %c0_36, %c0_37] : memref<9x8x128xbf16, #tpu.memory_space<vmem>>, vector<1x8x128xbf16>
      %40 = vector.shape_cast %39 : vector<1x8x128xbf16> to vector<8x128xbf16>
      %cst_38 = arith.constant dense<0.000000e+00> : vector<8x128xf32>
      %41 = tpu.matmul %38, %40, %cst_38 {dimension_numbers = #tpu.dot_dimension_numbers<[1], [0], [0], [1], [0, 0, 1, 1], [], []>} : vector<8x8xbf16>, vector<8x128xbf16>, vector<8x128xf32> -> vector<8x128xf32>
      %42 = arith.addf %33, %41 : vector<8x128xf32>
      %c1_i32_39 = arith.constant 1 : i32
      %43 = arith.addi %c1_i32_39, %5 : i32
      %c0_40 = arith.constant 0 : index
      %44 = arith.index_cast %43 : i32 to index
      %c0_41 = arith.constant 0 : index
      %c0_42 = arith.constant 0 : index
      %45 = vector.load %arg1[%c0_40, %44, %c0_41, %c0_42] : memref<1x10x10x8xbf16, #tpu.memory_space<vmem>>, vector<1x1x10x8xbf16>
      %46 = vector.shape_cast %45 : vector<1x1x10x8xbf16> to vector<10x8xbf16>
      %47 = vector.extract_strided_slice %46 {offsets = [1, 0], sizes = [8, 8], strides = [1, 1]} : vector<10x8xbf16> to vector<8x8xbf16>
      %c4 = arith.constant 4 : index
      %c0_43 = arith.constant 0 : index
      %c0_44 = arith.constant 0 : index
      %48 = vector.load %arg2[%c4, %c0_43, %c0_44] : memref<9x8x128xbf16, #tpu.memory_space<vmem>>, vector<1x8x128xbf16>
      %49 = vector.shape_cast %48 : vector<1x8x128xbf16> to vector<8x128xbf16>
      %cst_45 = arith.constant dense<0.000000e+00> : vector<8x128xf32>
      %50 = tpu.matmul %47, %49, %cst_45 {dimension_numbers = #tpu.dot_dimension_numbers<[1], [0], [0], [1], [0, 0, 1, 1], [], []>} : vector<8x8xbf16>, vector<8x128xbf16>, vector<8x128xf32> -> vector<8x128xf32>
      %51 = arith.addf %42, %50 : vector<8x128xf32>
      %c1_i32_46 = arith.constant 1 : i32
      %52 = arith.addi %c1_i32_46, %5 : i32
      %c0_47 = arith.constant 0 : index
      %53 = arith.index_cast %52 : i32 to index
      %c0_48 = arith.constant 0 : index
      %c0_49 = arith.constant 0 : index
      %54 = vector.load %arg1[%c0_47, %53, %c0_48, %c0_49] : memref<1x10x10x8xbf16, #tpu.memory_space<vmem>>, vector<1x1x10x8xbf16>
      %55 = vector.shape_cast %54 : vector<1x1x10x8xbf16> to vector<10x8xbf16>
      %56 = vector.extract_strided_slice %55 {offsets = [2, 0], sizes = [8, 8], strides = [1, 1]} : vector<10x8xbf16> to vector<8x8xbf16>
      %c5 = arith.constant 5 : index
      %c0_50 = arith.constant 0 : index
      %c0_51 = arith.constant 0 : index
      %57 = vector.load %arg2[%c5, %c0_50, %c0_51] : memref<9x8x128xbf16, #tpu.memory_space<vmem>>, vector<1x8x128xbf16>
      %58 = vector.shape_cast %57 : vector<1x8x128xbf16> to vector<8x128xbf16>
      %cst_52 = arith.constant dense<0.000000e+00> : vector<8x128xf32>
      %59 = tpu.matmul %56, %58, %cst_52 {dimension_numbers = #tpu.dot_dimension_numbers<[1], [0], [0], [1], [0, 0, 1, 1], [], []>} : vector<8x8xbf16>, vector<8x128xbf16>, vector<8x128xf32> -> vector<8x128xf32>
      %60 = arith.addf %51, %59 : vector<8x128xf32>
      %c2_i32 = arith.constant 2 : i32
      %61 = arith.addi %c2_i32, %5 : i32
      %c0_53 = arith.constant 0 : index
      %62 = arith.index_cast %61 : i32 to index
      %c0_54 = arith.constant 0 : index
      %c0_55 = arith.constant 0 : index
      %63 = vector.load %arg1[%c0_53, %62, %c0_54, %c0_55] : memref<1x10x10x8xbf16, #tpu.memory_space<vmem>>, vector<1x1x10x8xbf16>
      %64 = vector.shape_cast %63 : vector<1x1x10x8xbf16> to vector<10x8xbf16>
      %65 = vector.extract_strided_slice %64 {offsets = [0, 0], sizes = [8, 8], strides = [1, 1]} : vector<10x8xbf16> to vector<8x8xbf16>
      %c6 = arith.constant 6 : index
      %c0_56 = arith.constant 0 : index
      %c0_57 = arith.constant 0 : index
      %66 = vector.load %arg2[%c6, %c0_56, %c0_57] : memref<9x8x128xbf16, #tpu.memory_space<vmem>>, vector<1x8x128xbf16>
      %67 = vector.shape_cast %66 : vector<1x8x128xbf16> to vector<8x128xbf16>
      %cst_58 = arith.constant dense<0.000000e+00> : vector<8x128xf32>
      %68 = tpu.matmul %65, %67, %cst_58 {dimension_numbers = #tpu.dot_dimension_numbers<[1], [0], [0], [1], [0, 0, 1, 1], [], []>} : vector<8x8xbf16>, vector<8x128xbf16>, vector<8x128xf32> -> vector<8x128xf32>
      %69 = arith.addf %60, %68 : vector<8x128xf32>
      %c2_i32_59 = arith.constant 2 : i32
      %70 = arith.addi %c2_i32_59, %5 : i32
      %c0_60 = arith.constant 0 : index
      %71 = arith.index_cast %70 : i32 to index
      %c0_61 = arith.constant 0 : index
      %c0_62 = arith.constant 0 : index
      %72 = vector.load %arg1[%c0_60, %71, %c0_61, %c0_62] : memref<1x10x10x8xbf16, #tpu.memory_space<vmem>>, vector<1x1x10x8xbf16>
      %73 = vector.shape_cast %72 : vector<1x1x10x8xbf16> to vector<10x8xbf16>
      %74 = vector.extract_strided_slice %73 {offsets = [1, 0], sizes = [8, 8], strides = [1, 1]} : vector<10x8xbf16> to vector<8x8xbf16>
      %c7 = arith.constant 7 : index
      %c0_63 = arith.constant 0 : index
      %c0_64 = arith.constant 0 : index
      %75 = vector.load %arg2[%c7, %c0_63, %c0_64] : memref<9x8x128xbf16, #tpu.memory_space<vmem>>, vector<1x8x128xbf16>
      %76 = vector.shape_cast %75 : vector<1x8x128xbf16> to vector<8x128xbf16>
      %cst_65 = arith.constant dense<0.000000e+00> : vector<8x128xf32>
      %77 = tpu.matmul %74, %76, %cst_65 {dimension_numbers = #tpu.dot_dimension_numbers<[1], [0], [0], [1], [0, 0, 1, 1], [], []>} : vector<8x8xbf16>, vector<8x128xbf16>, vector<8x128xf32> -> vector<8x128xf32>
      %78 = arith.addf %69, %77 : vector<8x128xf32>
      %c2_i32_66 = arith.constant 2 : i32
      %79 = arith.addi %c2_i32_66, %5 : i32
      %c0_67 = arith.constant 0 : index
      %80 = arith.index_cast %79 : i32 to index
      %c0_68 = arith.constant 0 : index
      %c0_69 = arith.constant 0 : index
      %81 = vector.load %arg1[%c0_67, %80, %c0_68, %c0_69] : memref<1x10x10x8xbf16, #tpu.memory_space<vmem>>, vector<1x1x10x8xbf16>
      %82 = vector.shape_cast %81 : vector<1x1x10x8xbf16> to vector<10x8xbf16>
      %83 = vector.extract_strided_slice %82 {offsets = [2, 0], sizes = [8, 8], strides = [1, 1]} : vector<10x8xbf16> to vector<8x8xbf16>
      %c8 = arith.constant 8 : index
      %c0_70 = arith.constant 0 : index
      %c0_71 = arith.constant 0 : index
      %84 = vector.load %arg2[%c8, %c0_70, %c0_71] : memref<9x8x128xbf16, #tpu.memory_space<vmem>>, vector<1x8x128xbf16>
      %85 = vector.shape_cast %84 : vector<1x8x128xbf16> to vector<8x128xbf16>
      %cst_72 = arith.constant dense<0.000000e+00> : vector<8x128xf32>
      %86 = tpu.matmul %83, %85, %cst_72 {dimension_numbers = #tpu.dot_dimension_numbers<[1], [0], [0], [1], [0, 0, 1, 1], [], []>} : vector<8x8xbf16>, vector<8x128xbf16>, vector<8x128xf32> -> vector<8x128xf32>
      %87 = arith.addf %78, %86 : vector<8x128xf32>
      %c0_73 = arith.constant 0 : index
      %c0_74 = arith.constant 0 : index
      %88 = vector.load %arg3[%c0_73, %c0_74] : memref<1x128xf32, #tpu.memory_space<vmem>>, vector<1x128xf32>
      %89 = vector.broadcast %88 : vector<1x128xf32> to vector<8x128xf32>
      %90 = arith.addf %87, %89 : vector<8x128xf32>
      %cst_75 = arith.constant 0.000000e+00 : f32
      %91 = vector.broadcast %cst_75 : f32 to vector<8x128xf32>
      %92 = arith.maximumf %90, %91 : vector<8x128xf32>
      %c1_i32_76 = arith.constant 1 : i32
      %93 = arith.addi %c1_i32_76, %5 : i32
      %94 = arith.index_cast %93 : i32 to index
      %c1_77 = arith.constant 1 : index
      %c0_78 = arith.constant 0 : index
      %95 = vector.load %arg8[%94, %c1_77, %c0_78] : memref<10x10x128xf32, #tpu.memory_space<vmem>>, vector<1x8x128xf32>
      %96 = vector.shape_cast %95 : vector<1x8x128xf32> to vector<8x128xf32>
      %97 = vector.shape_cast %92 : vector<8x128xf32> to vector<1x8x128xf32>
      tpu.vector_store %arg8[%94, %c1_77, %c0_78], %97 {strides = array<i32>} : memref<10x10x128xf32, #tpu.memory_space<vmem>>, vector<1x8x128xf32>,
    }
    %c8_i32_2 = arith.constant 8 : i32
    %c0_i32_3 = arith.constant 0 : i32
    %c8_i32_4 = arith.constant 8 : i32
    %3 = arith.addi %c0_i32_3, %c8_i32_4 : i32
    %c1_i32_5 = arith.constant 1 : i32
    scf.for %arg9 = %c0_i32_3 to %3 step %c1_i32_5  : i32 {
      %c1_i32_7 = arith.constant 1 : i32
      %4 = arith.muli %arg9, %c1_i32_7 : i32
      %c0_i32_8 = arith.constant 0 : i32
      %5 = arith.addi %c0_i32_8, %4 : i32
      %cst_9 = arith.constant 0.000000e+00 : f32
      %6 = vector.broadcast %cst_9 : f32 to vector<8x128xf32>
      %c0_i32_10 = arith.constant 0 : i32
      %7 = arith.addi %5, %c0_i32_10 : i32
      %8 = arith.index_cast %7 : i32 to index
      %c0_11 = arith.constant 0 : index
      %c0_12 = arith.constant 0 : index
      %9 = vector.load %arg8[%8, %c0_11, %c0_12] : memref<10x10x128xf32, #tpu.memory_space<vmem>>, vector<1x10x128xf32>
      %10 = vector.shape_cast %9 : vector<1x10x128xf32> to vector<10x128xf32>
      %11 = vector.extract_strided_slice %10 {offsets = [0, 0], sizes = [8, 128], strides = [1, 1]} : vector<10x128xf32> to vector<8x128xf32>
      %12 = arith.truncf %11 : vector<8x128xf32> to vector<8x128xbf16>
      %c0_13 = arith.constant 0 : index
      %c0_14 = arith.constant 0 : index
      %c0_15 = arith.constant 0 : index
      %13 = vector.load %arg4[%c0_13, %c0_14, %c0_15] : memref<9x128x128xbf16, #tpu.memory_space<vmem>>, vector<1x128x128xbf16>
      %14 = vector.shape_cast %13 : vector<1x128x128xbf16> to vector<128x128xbf16>
      %cst_16 = arith.constant dense<0.000000e+00> : vector<8x128xf32>
      %15 = tpu.matmul %12, %14, %cst_16 {dimension_numbers = #tpu.dot_dimension_numbers<[1], [0], [0], [1], [0, 0, 1, 1], [], []>} : vector<8x128xbf16>, vector<128x128xbf16>, vector<8x128xf32> -> vector<8x128xf32>
      %16 = arith.addf %6, %15 : vector<8x128xf32>
      %c0_i32_17 = arith.constant 0 : i32
      %17 = arith.addi %5, %c0_i32_17 : i32
      %18 = arith.index_cast %17 : i32 to index
      %c0_18 = arith.constant 0 : index
      %c0_19 = arith.constant 0 : index
      %19 = vector.load %arg8[%18, %c0_18, %c0_19] : memref<10x10x128xf32, #tpu.memory_space<vmem>>, vector<1x10x128xf32>
      %20 = vector.shape_cast %19 : vector<1x10x128xf32> to vector<10x128xf32>
      %21 = vector.extract_strided_slice %20 {offsets = [1, 0], sizes = [8, 128], strides = [1, 1]} : vector<10x128xf32> to vector<8x128xf32>
      %22 = arith.truncf %21 : vector<8x128xf32> to vector<8x128xbf16>
      %c1 = arith.constant 1 : index
      %c0_20 = arith.constant 0 : index
      %c0_21 = arith.constant 0 : index
      %23 = vector.load %arg4[%c1, %c0_20, %c0_21] : memref<9x128x128xbf16, #tpu.memory_space<vmem>>, vector<1x128x128xbf16>
      %24 = vector.shape_cast %23 : vector<1x128x128xbf16> to vector<128x128xbf16>
      %cst_22 = arith.constant dense<0.000000e+00> : vector<8x128xf32>
      %25 = tpu.matmul %22, %24, %cst_22 {dimension_numbers = #tpu.dot_dimension_numbers<[1], [0], [0], [1], [0, 0, 1, 1], [], []>} : vector<8x128xbf16>, vector<128x128xbf16>, vector<8x128xf32> -> vector<8x128xf32>
      %26 = arith.addf %16, %25 : vector<8x128xf32>
      %c0_i32_23 = arith.constant 0 : i32
      %27 = arith.addi %5, %c0_i32_23 : i32
      %28 = arith.index_cast %27 : i32 to index
      %c0_24 = arith.constant 0 : index
      %c0_25 = arith.constant 0 : index
      %29 = vector.load %arg8[%28, %c0_24, %c0_25] : memref<10x10x128xf32, #tpu.memory_space<vmem>>, vector<1x10x128xf32>
      %30 = vector.shape_cast %29 : vector<1x10x128xf32> to vector<10x128xf32>
      %31 = vector.extract_strided_slice %30 {offsets = [2, 0], sizes = [8, 128], strides = [1, 1]} : vector<10x128xf32> to vector<8x128xf32>
      %32 = arith.truncf %31 : vector<8x128xf32> to vector<8x128xbf16>
      %c2 = arith.constant 2 : index
      %c0_26 = arith.constant 0 : index
      %c0_27 = arith.constant 0 : index
      %33 = vector.load %arg4[%c2, %c0_26, %c0_27] : memref<9x128x128xbf16, #tpu.memory_space<vmem>>, vector<1x128x128xbf16>
      %34 = vector.shape_cast %33 : vector<1x128x128xbf16> to vector<128x128xbf16>
      %cst_28 = arith.constant dense<0.000000e+00> : vector<8x128xf32>
      %35 = tpu.matmul %32, %34, %cst_28 {dimension_numbers = #tpu.dot_dimension_numbers<[1], [0], [0], [1], [0, 0, 1, 1], [], []>} : vector<8x128xbf16>, vector<128x128xbf16>, vector<8x128xf32> -> vector<8x128xf32>
      %36 = arith.addf %26, %35 : vector<8x128xf32>
      %c1_i32_29 = arith.constant 1 : i32
      %37 = arith.addi %5, %c1_i32_29 : i32
      %38 = arith.index_cast %37 : i32 to index
      %c0_30 = arith.constant 0 : index
      %c0_31 = arith.constant 0 : index
      %39 = vector.load %arg8[%38, %c0_30, %c0_31] : memref<10x10x128xf32, #tpu.memory_space<vmem>>, vector<1x10x128xf32>
      %40 = vector.shape_cast %39 : vector<1x10x128xf32> to vector<10x128xf32>
      %41 = vector.extract_strided_slice %40 {offsets = [0, 0], sizes = [8, 128], strides = [1, 1]} : vector<10x128xf32> to vector<8x128xf32>
      %42 = arith.truncf %41 : vector<8x128xf32> to vector<8x128xbf16>
      %c3 = arith.constant 3 : index
      %c0_32 = arith.constant 0 : index
      %c0_33 = arith.constant 0 : index
      %43 = vector.load %arg4[%c3, %c0_32, %c0_33] : memref<9x128x128xbf16, #tpu.memory_space<vmem>>, vector<1x128x128xbf16>
      %44 = vector.shape_cast %43 : vector<1x128x128xbf16> to vector<128x128xbf16>
      %cst_34 = arith.constant dense<0.000000e+00> : vector<8x128xf32>
      %45 = tpu.matmul %42, %44, %cst_34 {dimension_numbers = #tpu.dot_dimension_numbers<[1], [0], [0], [1], [0, 0, 1, 1], [], []>} : vector<8x128xbf16>, vector<128x128xbf16>, vector<8x128xf32> -> vector<8x128xf32>
      %46 = arith.addf %36, %45 : vector<8x128xf32>
      %c1_i32_35 = arith.constant 1 : i32
      %47 = arith.addi %5, %c1_i32_35 : i32
      %48 = arith.index_cast %47 : i32 to index
      %c0_36 = arith.constant 0 : index
      %c0_37 = arith.constant 0 : index
      %49 = vector.load %arg8[%48, %c0_36, %c0_37] : memref<10x10x128xf32, #tpu.memory_space<vmem>>, vector<1x10x128xf32>
      %50 = vector.shape_cast %49 : vector<1x10x128xf32> to vector<10x128xf32>
      %51 = vector.extract_strided_slice %50 {offsets = [1, 0], sizes = [8, 128], strides = [1, 1]} : vector<10x128xf32> to vector<8x128xf32>
      %52 = arith.truncf %51 : vector<8x128xf32> to vector<8x128xbf16>
      %c4 = arith.constant 4 : index
      %c0_38 = arith.constant 0 : index
      %c0_39 = arith.constant 0 : index
      %53 = vector.load %arg4[%c4, %c0_38, %c0_39] : memref<9x128x128xbf16, #tpu.memory_space<vmem>>, vector<1x128x128xbf16>
      %54 = vector.shape_cast %53 : vector<1x128x128xbf16> to vector<128x128xbf16>
      %cst_40 = arith.constant dense<0.000000e+00> : vector<8x128xf32>
      %55 = tpu.matmul %52, %54, %cst_40 {dimension_numbers = #tpu.dot_dimension_numbers<[1], [0], [0], [1], [0, 0, 1, 1], [], []>} : vector<8x128xbf16>, vector<128x128xbf16>, vector<8x128xf32> -> vector<8x128xf32>
      %56 = arith.addf %46, %55 : vector<8x128xf32>
      %c1_i32_41 = arith.constant 1 : i32
      %57 = arith.addi %5, %c1_i32_41 : i32
      %58 = arith.index_cast %57 : i32 to index
      %c0_42 = arith.constant 0 : index
      %c0_43 = arith.constant 0 : index
      %59 = vector.load %arg8[%58, %c0_42, %c0_43] : memref<10x10x128xf32, #tpu.memory_space<vmem>>, vector<1x10x128xf32>
      %60 = vector.shape_cast %59 : vector<1x10x128xf32> to vector<10x128xf32>
      %61 = vector.extract_strided_slice %60 {offsets = [2, 0], sizes = [8, 128], strides = [1, 1]} : vector<10x128xf32> to vector<8x128xf32>
      %62 = arith.truncf %61 : vector<8x128xf32> to vector<8x128xbf16>
      %c5 = arith.constant 5 : index
      %c0_44 = arith.constant 0 : index
      %c0_45 = arith.constant 0 : index
      %63 = vector.load %arg4[%c5, %c0_44, %c0_45] : memref<9x128x128xbf16, #tpu.memory_space<vmem>>, vector<1x128x128xbf16>
      %64 = vector.shape_cast %63 : vector<1x128x128xbf16> to vector<128x128xbf16>
      %cst_46 = arith.constant dense<0.000000e+00> : vector<8x128xf32>
      %65 = tpu.matmul %62, %64, %cst_46 {dimension_numbers = #tpu.dot_dimension_numbers<[1], [0], [0], [1], [0, 0, 1, 1], [], []>} : vector<8x128xbf16>, vector<128x128xbf16>, vector<8x128xf32> -> vector<8x128xf32>
      %66 = arith.addf %56, %65 : vector<8x128xf32>
      %c2_i32 = arith.constant 2 : i32
      %67 = arith.addi %5, %c2_i32 : i32
      %68 = arith.index_cast %67 : i32 to index
      %c0_47 = arith.constant 0 : index
      %c0_48 = arith.constant 0 : index
      %69 = vector.load %arg8[%68, %c0_47, %c0_48] : memref<10x10x128xf32, #tpu.memory_space<vmem>>, vector<1x10x128xf32>
      %70 = vector.shape_cast %69 : vector<1x10x128xf32> to vector<10x128xf32>
      %71 = vector.extract_strided_slice %70 {offsets = [0, 0], sizes = [8, 128], strides = [1, 1]} : vector<10x128xf32> to vector<8x128xf32>
      %72 = arith.truncf %71 : vector<8x128xf32> to vector<8x128xbf16>
      %c6 = arith.constant 6 : index
      %c0_49 = arith.constant 0 : index
      %c0_50 = arith.constant 0 : index
      %73 = vector.load %arg4[%c6, %c0_49, %c0_50] : memref<9x128x128xbf16, #tpu.memory_space<vmem>>, vector<1x128x128xbf16>
      %74 = vector.shape_cast %73 : vector<1x128x128xbf16> to vector<128x128xbf16>
      %cst_51 = arith.constant dense<0.000000e+00> : vector<8x128xf32>
      %75 = tpu.matmul %72, %74, %cst_51 {dimension_numbers = #tpu.dot_dimension_numbers<[1], [0], [0], [1], [0, 0, 1, 1], [], []>} : vector<8x128xbf16>, vector<128x128xbf16>, vector<8x128xf32> -> vector<8x128xf32>
      %76 = arith.addf %66, %75 : vector<8x128xf32>
      %c2_i32_52 = arith.constant 2 : i32
      %77 = arith.addi %5, %c2_i32_52 : i32
      %78 = arith.index_cast %77 : i32 to index
      %c0_53 = arith.constant 0 : index
      %c0_54 = arith.constant 0 : index
      %79 = vector.load %arg8[%78, %c0_53, %c0_54] : memref<10x10x128xf32, #tpu.memory_space<vmem>>, vector<1x10x128xf32>
      %80 = vector.shape_cast %79 : vector<1x10x128xf32> to vector<10x128xf32>
      %81 = vector.extract_strided_slice %80 {offsets = [1, 0], sizes = [8, 128], strides = [1, 1]} : vector<10x128xf32> to vector<8x128xf32>
      %82 = arith.truncf %81 : vector<8x128xf32> to vector<8x128xbf16>
      %c7 = arith.constant 7 : index
      %c0_55 = arith.constant 0 : index
      %c0_56 = arith.constant 0 : index
      %83 = vector.load %arg4[%c7, %c0_55, %c0_56] : memref<9x128x128xbf16, #tpu.memory_space<vmem>>, vector<1x128x128xbf16>
      %84 = vector.shape_cast %83 : vector<1x128x128xbf16> to vector<128x128xbf16>
      %cst_57 = arith.constant dense<0.000000e+00> : vector<8x128xf32>
      %85 = tpu.matmul %82, %84, %cst_57 {dimension_numbers = #tpu.dot_dimension_numbers<[1], [0], [0], [1], [0, 0, 1, 1], [], []>} : vector<8x128xbf16>, vector<128x128xbf16>, vector<8x128xf32> -> vector<8x128xf32>
      %86 = arith.addf %76, %85 : vector<8x128xf32>
      %c2_i32_58 = arith.constant 2 : i32
      %87 = arith.addi %5, %c2_i32_58 : i32
      %88 = arith.index_cast %87 : i32 to index
      %c0_59 = arith.constant 0 : index
      %c0_60 = arith.constant 0 : index
      %89 = vector.load %arg8[%88, %c0_59, %c0_60] : memref<10x10x128xf32, #tpu.memory_space<vmem>>, vector<1x10x128xf32>
      %90 = vector.shape_cast %89 : vector<1x10x128xf32> to vector<10x128xf32>
      %91 = vector.extract_strided_slice %90 {offsets = [2, 0], sizes = [8, 128], strides = [1, 1]} : vector<10x128xf32> to vector<8x128xf32>
      %92 = arith.truncf %91 : vector<8x128xf32> to vector<8x128xbf16>
      %c8 = arith.constant 8 : index
      %c0_61 = arith.constant 0 : index
      %c0_62 = arith.constant 0 : index
      %93 = vector.load %arg4[%c8, %c0_61, %c0_62] : memref<9x128x128xbf16, #tpu.memory_space<vmem>>, vector<1x128x128xbf16>
      %94 = vector.shape_cast %93 : vector<1x128x128xbf16> to vector<128x128xbf16>
      %cst_63 = arith.constant dense<0.000000e+00> : vector<8x128xf32>
      %95 = tpu.matmul %92, %94, %cst_63 {dimension_numbers = #tpu.dot_dimension_numbers<[1], [0], [0], [1], [0, 0, 1, 1], [], []>} : vector<8x128xbf16>, vector<128x128xbf16>, vector<8x128xf32> -> vector<8x128xf32>
      %96 = arith.addf %86, %95 : vector<8x128xf32>
      %c1_i32_64 = arith.constant 1 : i32
      %97 = arith.addi %c1_i32_64, %5 : i32
      %c0_65 = arith.constant 0 : index
      %98 = arith.index_cast %97 : i32 to index
      %c0_66 = arith.constant 0 : index
      %c0_67 = arith.constant 0 : index
      %99 = vector.load %arg1[%c0_65, %98, %c0_66, %c0_67] : memref<1x10x10x8xbf16, #tpu.memory_space<vmem>>, vector<1x1x10x8xbf16>
      %100 = vector.shape_cast %99 : vector<1x1x10x8xbf16> to vector<10x8xbf16>
      %101 = vector.extract_strided_slice %100 {offsets = [1, 0], sizes = [8, 8], strides = [1, 1]} : vector<10x8xbf16> to vector<8x8xbf16>
      %c0_68 = arith.constant 0 : index
      %c0_69 = arith.constant 0 : index
      %102 = vector.load %arg5[%c0_68, %c0_69] : memref<8x128xbf16, #tpu.memory_space<vmem>>, vector<8x128xbf16>
      %cst_70 = arith.constant dense<0.000000e+00> : vector<8x128xf32>
      %103 = tpu.matmul %101, %102, %cst_70 {dimension_numbers = #tpu.dot_dimension_numbers<[1], [0], [0], [1], [0, 0, 1, 1], [], []>} : vector<8x8xbf16>, vector<8x128xbf16>, vector<8x128xf32> -> vector<8x128xf32>
      %104 = arith.addf %96, %103 : vector<8x128xf32>
      %c0_71 = arith.constant 0 : index
      %c0_72 = arith.constant 0 : index
      %105 = vector.load %arg6[%c0_71, %c0_72] : memref<1x128xf32, #tpu.memory_space<vmem>>, vector<1x128xf32>
      %106 = vector.broadcast %105 : vector<1x128xf32> to vector<8x128xf32>
      %107 = arith.addf %104, %106 : vector<8x128xf32>
      %cst_73 = arith.constant 0.000000e+00 : f32
      %108 = vector.broadcast %cst_73 : f32 to vector<8x128xf32>
      %109 = arith.maximumf %107, %108 : vector<8x128xf32>
      %c0_74 = arith.constant 0 : index
      %110 = arith.index_cast %5 : i32 to index
      %c0_75 = arith.constant 0 : index
      %c0_76 = arith.constant 0 : index
      %111 = vector.load %arg7[%c0_74, %110, %c0_75, %c0_76] : memref<1x8x8x128xf32, #tpu.memory_space<vmem>>, vector<1x1x8x128xf32>
      %112 = vector.shape_cast %111 : vector<1x1x8x128xf32> to vector<8x128xf32>
      %113 = vector.shape_cast %109 : vector<8x128xf32> to vector<1x1x8x128xf32>
      tpu.vector_store %arg7[%c0_74, %110, %c0_75, %c0_76], %113 {strides = array<i32>} : memref<1x8x8x128xf32, #tpu.memory_space<vmem>>, vector<1x1x8x128xf32>,
    }
    %c8_i32_6 = arith.constant 8 : i32
    return
  }
  func.func @transform_0(%arg0: i32) -> (i32, i32, i32, i32) {
    %c0_i32 = arith.constant 0 : i32
    %c0_i32_0 = arith.constant 0 : i32
    %c0_i32_1 = arith.constant 0 : i32
    %c0_i32_2 = arith.constant 0 : i32
    return %arg0, %c0_i32, %c0_i32_0, %c0_i32_1 : i32, i32, i32, i32
  }
  func.func @transform_1(%arg0: i32) -> (i32, i32, i32) {
    %c0_i32 = arith.constant 0 : i32
    %c0_i32_0 = arith.constant 0 : i32
    %c0_i32_1 = arith.constant 0 : i32
    %c0_i32_2 = arith.constant 0 : i32
    return %c0_i32, %c0_i32_0, %c0_i32_1 : i32, i32, i32
  }
  func.func @transform_2(%arg0: i32) -> (i32, i32) {
    %c0_i32 = arith.constant 0 : i32
    %c0_i32_0 = arith.constant 0 : i32
    %c0_i32_1 = arith.constant 0 : i32
    return %c0_i32, %c0_i32_0 : i32, i32
  }
  func.func @transform_3(%arg0: i32) -> (i32, i32, i32) {
    %c0_i32 = arith.constant 0 : i32
    %c0_i32_0 = arith.constant 0 : i32
    %c0_i32_1 = arith.constant 0 : i32
    %c0_i32_2 = arith.constant 0 : i32
    return %c0_i32, %c0_i32_0, %c0_i32_1 : i32, i32, i32
  }
  func.func @transform_4(%arg0: i32) -> (i32, i32) {
    %c0_i32 = arith.constant 0 : i32
    %c0_i32_0 = arith.constant 0 : i32
    %c0_i32_1 = arith.constant 0 : i32
    return %c0_i32, %c0_i32_0 : i32, i32
  }
  func.func @transform_5(%arg0: i32) -> (i32, i32) {
    %c0_i32 = arith.constant 0 : i32
    %c0_i32_0 = arith.constant 0 : i32
    %c0_i32_1 = arith.constant 0 : i32
    return %c0_i32, %c0_i32_0 : i32, i32
  }
  func.func @transform_6(%arg0: i32) -> (i32, i32, i32, i32) {
    %c0_i32 = arith.constant 0 : i32
    %c0_i32_0 = arith.constant 0 : i32
    %c0_i32_1 = arith.constant 0 : i32
    %c0_i32_2 = arith.constant 0 : i32
    return %arg0, %c0_i32, %c0_i32_0, %c0_i32_1 : i32, i32, i32, i32
  }
}

</mosaic_0001>

<bundles_post_ra>
// kernel: fwd.3
= control target key start
LH: loop header
LB: loop body
LE: loop exit
PB: predicated region body
PF: predicated region fallthrough
CT: control target
= control target key end

     0   :  { %s2093_s21 = smov 0   ;;  %s2437_s0 = inlined_call_operand.vmem [shape: bf16[2,10,10,8], index: 0, kind: input, shape index: {}]   ;;  %s2438_s1 = inlined_call_operand.vmem [shape: bf16[9,8,128], index: 1, kind: input, shape index: {}]   ;;  %s2439_s2 = inlined_call_operand.vmem [shape: f32[1,128], index: 2, kind: input, shape index: {}]   ;;  %s2440_s3 = inlined_call_operand.vmem [shape: bf16[9,128,128], index: 3, kind: input, shape index: {}]   ;;  %s2441_s4 = inlined_call_operand.vmem [shape: bf16[8,128], index: 4, kind: input, shape index: {}]   ;;  %s2442_s5 = inlined_call_operand.vmem [shape: f32[1,128], index: 5, kind: input, shape index: {}]   ;;  %s2443_s6 = inlined_call_operand.vmem [shape: f32[2,8,8,128], index: 6, kind: output, shape index: {}]  }
   0x1 LB: > { %s1446_s22 = sadd.s32 4294967295, %s2047_s21   ;;  %p1450_p0 = scmp.ge.s32.totalorder %s2047_s21, 1  ;;  %s2047_s21 = sphi %s2093_s21, %s16_s21  }
   0x2   : > { %p212_p1 = scmp.lt.s32.totalorder %s2047_s21, 3 }
   0x4   : > { %p213_p2 = pnand %p1450_p0, %p212_p1 }
   0x5   : > { %p242_p3 = scmp.lt.s32.totalorder (!%p213_p2), %s1446_s22, 1  ;;  %s2111_s7 = smov (!%p213_p2), 0  }
   0x6   : > { %216 = sbr.rel (%p213_p2) target bundleno = 442 (0x1ba), region = 44 }
   0xb   : > { %v2057_v0 = vmov 0.0   ;;  %s2445_s22 = smov (!%p242_p3, %s1446_s22), 1 }
   0xc   : > { %253 = vst [vmem:[#allocation2] sm:$0xff] %v2057_v0  ;;  %s2005_s23 = smul.u32 80, %s2445_s22  ;;  %s1927_s24 = sshll.u32 %s2445_s22, 6 }
   0xd   : > { %254 = vst [vmem:[#allocation2 + $0x8] sm:$0x3] %v2057_v0  ;;  %s2104_s27 = scalar_lea.vmem %s2443_s6, %s1927_s24 }
   0xe   : > { %255 = vst [vmem:[#allocation2 + $0x10] sm:$0xff] %v2057_v0  ;;  %s2109_s30 = scalar_lea.vmem %s2437_s0, %s2005_s23 }
   0xf   : > { %256 = vst [vmem:[#allocation2 + $0x18] sm:$0x3] %v2057_v0 }
  0x10   : > { %257 = vst [vmem:[#allocation2 + $0x20] sm:$0xff] %v2057_v0 }
  0x11   : > { %258 = vst [vmem:[#allocation2 + $0x28] sm:$0x3] %v2057_v0 }
  0x12   : > { %259 = vst [vmem:[#allocation2 + $0x30] sm:$0xff] %v2057_v0 }
  0x13   : > { %260 = vst [vmem:[#allocation2 + $0x38] sm:$0x3] %v2057_v0 }
  0x14   : > { %261 = vst [vmem:[#allocation2 + $0x40] sm:$0xff] %v2057_v0 }
  0x15   : > { %262 = vst [vmem:[#allocation2 + $0x48] sm:$0x3] %v2057_v0 }
  0x16   : > { %263 = vst [vmem:[#allocation2 + $0x50] sm:$0xff] %v2057_v0 }
  0x17   : > { %264 = vst [vmem:[#allocation2 + $0x58] sm:$0x3] %v2057_v0 }
  0x18   : > { %265 = vst [vmem:[#allocation2 + $0x60] sm:$0xff] %v2057_v0 }
  0x19   : > { %266 = vst [vmem:[#allocation2 + $0x68] sm:$0x3] %v2057_v0 }
  0x1a   : > { %267 = vst [vmem:[#allocation2 + $0x70] sm:$0xff] %v2057_v0 }
  0x1b   : > { %268 = vst [vmem:[#allocation2 + $0x78] sm:$0x3] %v2057_v0 }
  0x1c   : > { %269 = vst [vmem:[#allocation2 + $0x80] sm:$0xff] %v2057_v0 }
  0x1d   : > { %270 = vst [vmem:[#allocation2 + $0x88] sm:$0x3] %v2057_v0 }
  0x1e   : > { %271 = vst [vmem:[#allocation2 + $0x90] sm:$0xff] %v2057_v0 }
  0x1f   : > { %272 = vst [vmem:[#allocation2 + $0x98] sm:$0x3] %v2057_v0 }
  0x20 LB: >> { %vm303_vm0 = vcmask 1043456   ;;  %v1463_v1 = vld [vmem:[%s2438_s1 + $0x8] sm:$0xf]  ;;  %v1468_v2 = vld [vmem:[%s2438_s1 + $0xc] sm:$0xf]  ;;  %s1928_s16 = sshll.u32 %s2051_s7, 3  ;;  %s2051_s7 = sphi %s2111_s7, %s278_s7  }
  0x21   : >> { %v346_v3 = vsel %vm303_vm0, %v1463_v1, 0  ;;  %v374_v4 = vsel %vm303_vm0, %v1468_v2, 0  ;;  %v1456_v5 = vld [vmem:[%s2438_s1 + $0x4] sm:$0xf]  ;;  %v284_v6 = vld [vmem:[%s2438_s1] sm:$0xf]  ;;  %s2137_s19 = scalar_lea.vmem %s2109_s30, %s1928_s16 }
  0x22   : >> { %355 = vmatpush.bf16.msra.mxu2 %v346_v3  ;;  %383 = vmatpush.bf16.msra.mxu3 %v374_v4  ;;  %v305_v7 = vsel %vm303_vm0, %v1456_v5, 0  ;;  %v324_v8 = vsel %vm303_vm0, %v284_v6, 0  ;;  %v1470_v9 = vld [vmem:[%s2438_s1 + $0x10] sm:$0xf]  ;;  %vm299_vm1 = vcmask 64512   ;;  %s1491_s10 = sshll.u32 %s2051_s7, 4 }
  0x23   : >> { %314 = vmatpush.bf16.msra.mxu0 %v305_v7  ;;  %333 = vmatpush.bf16.msra.mxu1 %v324_v8  ;;  %v408_v10 = vsel %vm303_vm0, %v1470_v9, 0  ;;  %v1481_v11 = vld [vmem:[%s2438_s1 + $0x18] sm:$0xf]  ;;  %v1483_v12 = vld [vmem:[%s2438_s1 + $0x1c] sm:$0xf]  ;;  %s1397_s11 = scalar_lea.vmem [#allocation2], %s1491_s10 }
  0x24   : >> { %v1459_v13 = vld [vmem:[%s2137_s19] sm:$0xf]  ;;  %v1929_v14 = vld [vmem:[%s2137_s19] sm:$0x10]  ;;  %v1466_v15 = vld [vmem:[%s2137_s19 + $0x8] sm:$0xf] }
  0x25   : >> { %v1460_v16 = vor.u32 %v1929_v14, %v1459_v13  ;;  %1469 = vmatmul.msk.bf16.vlgmr.msra.gmra.mxu3 %vm299_vm1, %v1466_v15  ;;  %v282_v17 = vld [vmem:[%s2137_s19] sm:$0xf]  ;;  %v459_v18 = vsel %vm303_vm0, %v1481_v11, 0  ;;  %v493_v19 = vsel %vm303_vm0, %v1483_v12, 0  ;;  %v1476_v20 = vld [vmem:[%s2438_s1 + $0x14] sm:$0xf] }
  0x26   : >> { %1462 = vmatmul.msk.bf16.vlgmr.msra.gmra.mxu1 %vm299_vm1, %v282_v17  ;;  %468 = vmatpush.bf16.msrb.mxu2 %v459_v18  ;;  %v431_v21 = vsel %vm303_vm0, %v1476_v20, 0  ;;  %v1486_v25 = vld [vmem:[%s2137_s19 + $0x10] sm:$0xf]  ;;  %v1931_v26 = vld [vmem:[%s2137_s19 + $0x10] sm:$0x10]  ;;  %s278_s7 = sadd.s32 1, %s2051_s7  }
  0x27   : >> { %417 = vmatpush.bf16.msrb.mxu0 %v408_v10  ;;  %v341_v22 = vrot.slane %v1460_v16, 1  ;;  %v293_v23 = vshrl.u32 %v1460_v16, 16  ;;  %v295_v24 = vshll.u32 %v1460_v16, 16  ;;  %502 = vmatpush.bf16.msrb.mxu3 %v493_v19  ;;  %v1489_v27 = vld [vmem:[%s2438_s1 + $0x20] sm:$0xf]  ;;  %v1487_v29 = vor.u32 %v1931_v26, %v1486_v25  ;;  %p275_p4 = scmp.ge.s32.totalorder %s278_s7, 8  }
  0x28   : >> { %440 = vmatpush.bf16.msrb.mxu1 %v431_v21  ;;  %v1473_v30 = vld [vmem:[%s2137_s19 + $0x8] sm:$0xf]  ;;  %v1930_v31 = vld [vmem:[%s2137_s19 + $0x8] sm:$0x10]  ;;  %v516_v34 = vsel %vm303_vm0, %v1489_v27, 0  ;;  %s2181_s12 = smov (%p275_p4), 0  }
  0x29   : >> { %1464 = vmatmul.msk.bf16.vlgmr.msra.gmra.mxu2 %vm299_vm1, %v341_v22  ;;  %v297_v28 = vrot.slane %v295_v24, 1  ;;  %v485_v33 = vshll.u32 %v1487_v29, 16  ;;  %v1474_v35 = vor.u32 %v1930_v31, %v1473_v30  ;;  %v483_v36 = vshrl.u32 %v1487_v29, 16  ;;  %v1479_v43 = vld [vmem:[%s2137_s19 + $0x10] sm:$0xf] }
  0x2a   : >> { %v511_v45 = vrot.slane %v1487_v29, 1  ;;  %v2031_v5 = vld [vmem:[%s2439_s2] ss:$0 sm:$0xff] }
  0x2b   : >> { %v298_v32 = vor.u32 %v297_v28, %v293_v23  ;;  %v487_v37 = vrot.slane %v485_v33, 1  ;;  %v400_v38 = vshll.u32 %v1474_v35, 16  ;;  %v426_v40 = vrot.slane %v1474_v35, 1 }
  0x2c   : >> { %v398_v41 = vshrl.u32 %v1474_v35, 16 }
  0x2d   : >> { %1461 = vmatmul.msk.bf16.vlgmr.msra.gmra.mxu0 %vm299_vm1, %v298_v32  ;;  %v488_v39 = vor.u32 %v487_v37, %v483_v36  ;;  %v402_v42 = vrot.slane %v400_v38, 1 }
  0x2e   : >> { %525 = vmatpush.bf16.msra.mxu0 %v516_v34 }
  0x2f   : >> { %v403_v44 = vor.u32 %v402_v42, %v398_v41 }
  0x35   : >> { %1488 = vmatmul.msk.bf16.vlgmr.msrb.gmra.mxu3 %vm299_vm1, %v488_v39 }
  0x36   : >> { %1477 = vmatmul.msk.bf16.vlgmr.msrb.gmra.mxu1 %vm299_vm1, %v426_v40 }
  0x39   : >> { %1482 = vmatmul.msk.bf16.vlgmr.msrb.gmra.mxu2 %vm299_vm1, %v1479_v43 }
  0x3d   : >> { %1475 = vmatmul.msk.bf16.vlgmr.msrb.gmra.mxu0 %vm299_vm1, %v403_v44 }
  0x4d   : >> { %1490 = vmatmul.msk.bf16.vlgmr.msra.gmra.mxu0 %vm299_vm1, %v511_v45 }
  0xa3   : >> { %v335_v46 = vpop.f32.mrf.mxu1 }
  0xa8   : >> { %v385_v47 = vpop.f32.mrf.mxu3 }
  0xaa   : >> { %v316_v48 = vpop.f32.mrf.mxu0 }
  0xab   : >> { %v337_v49 = vpop.f32.mrf.mxu1  ;;  %v336_v53 = vadd.f32 %v335_v46, %v316_v48 }
  0xac   : >> { %v357_v50 = vpop.f32.mrf.mxu2 }
  0xad   : >> { %v361_v56 = vadd.f32 %v357_v50, %v336_v53 }
  0xaf   : >> { %v389_v59 = vadd.f32 %v385_v47, %v361_v56 }
  0xb0   : >> { %v387_v51 = vpop.f32.mrf.mxu3 }
  0xb2   : >> { %v318_v52 = vpop.f32.mrf.mxu0 }
  0xb3   : >> { %v442_v54 = vpop.f32.mrf.mxu1 }
  0xb4   : >> { %v359_v55 = vpop.f32.mrf.mxu2 }
  0xb8   : >> { %v504_v57 = vpop.f32.mrf.mxu3 }
  0xba   : >> { %v419_v58 = vpop.f32.mrf.mxu0 }
  0xbb   : >> { %v444_v60 = vpop.f32.mrf.mxu1  ;;  %v423_v62 = vadd.f32 %v419_v58, %v389_v59 }
  0xbc   : >> { %v470_v61 = vpop.f32.mrf.mxu2 }
  0xbd   : >> { %v446_v0 = vadd.f32 %v442_v54, %v423_v62 }
  0xbf   : >> { %v474_v3 = vadd.f32 %v470_v61, %v446_v0 }
  0xc0   : >> { %v506_v63 = vpop.f32.mrf.mxu3 }
  0xc1   : >> { %v508_v4 = vadd.f32 %v504_v57, %v474_v3 }
  0xc2   : >> { %v421_v1 = vpop.f32.mrf.mxu0 }
  0xc4   : >> { %v472_v2 = vpop.f32.mrf.mxu2 }
  0xca   : >> { %v527_v6 = vpop.f32.mrf.mxu0 }
  0xcb   : >> { %v531_v7 = vadd.f32 %v527_v6, %v508_v4 }
  0xcd   : >> { %v536_v8 = vadd.f32 %v2031_v5, %v531_v7 }
  0xce   : > { %277 = sbr.rel (!%p275_p4) target bundleno = 32 (0x20), region = 113 }
  0xcf   : >> { %v537_v9 = vmax.f32 %v536_v8, 0.0 }
  0xd1   : >> { %1492 = vst [vmem:[%s1397_s11 + $0x11] sm:$0xff] %v537_v9 }
  0xd2   : >> { %v529_v10 = vpop.f32.mrf.mxu0 }
  0xd3 LB: >> { %v1947_v11 = vld [vmem:[%s2440_s3 + $0x78] sm:$0xff]  ;;  %v1946_v15 = vld [vmem:[%s2440_s3 + $0x70] sm:$0xff]  ;;  %v1945_v19 = vld [vmem:[%s2440_s3 + $0x68] sm:$0xff]  ;;  %s1493_s17 = sshll.u32 %s2055_s12, 4  ;;  %s1916_s24 = sshll.u32 %s2055_s12, 3  ;;  %s2055_s12 = sphi %s2181_s12, %s546_s12  }
  0xd4   : >> { %v1955_v12 = vld [vmem:[%s2440_s3 + $0xb8] sm:$0xff]  ;;  %642 = vmatpush.bf16.msra.mxu0 %v1947_v11  ;;  %v1954_v16 = vld [vmem:[%s2440_s3 + $0xb0] sm:$0xff]  ;;  %v1953_v20 = vld [vmem:[%s2440_s3 + $0xa8] sm:$0xff]  ;;  %s2247_s14 = scalar_lea.vmem [#allocation2], %s1493_s17  ;;  %s1408_s9 = scalar_lea.vmem %s2109_s30, %s1916_s24 }
  0xd5   : >> { %v1963_v13 = vld [vmem:[%s2440_s3 + $0xf8] sm:$0xff]  ;;  %784 = vmatpush.bf16.msra.mxu2 %v1955_v12  ;;  %v1962_v17 = vld [vmem:[%s2440_s3 + $0xf0] sm:$0xff]  ;;  %v1961_v21 = vld [vmem:[%s2440_s3 + $0xe8] sm:$0xff]  ;;  %s1355_s29 = scalar_lea.vmem %s2104_s27, %s1916_s24  ;;  %s546_s12 = sadd.s32 1, %s2055_s12  }
  0xd6   : >> { %v1939_v14 = vld [vmem:[%s2440_s3 + $0x38] sm:$0xff]  ;;  %869 = vmatpush.bf16.msra.mxu3 %v1963_v13  ;;  %v1938_v18 = vld [vmem:[%s2440_s3 + $0x30] sm:$0xff]  ;;  %v1937_v22 = vld [vmem:[%s2440_s3 + $0x28] sm:$0xff]  ;;  %p543_p5 = scmp.ge.s32.totalorder %s546_s12, 8  }
  0xd7   : >> { %703 = vmatpush.bf16.msra.mxu1 %v1939_v14  ;;  %v1944_v23 = vld [vmem:[%s2440_s3 + $0x60] sm:$0xff]  ;;  %v1943_v27 = vld [vmem:[%s2440_s3 + $0x58] sm:$0xff]  ;;  %v1942_v33 = vld [vmem:[%s2440_s3 + $0x50] sm:$0xff] }
  0xd8   : >> { %643 = vmatpush.bf16.msra.mxu0 %v1946_v15  ;;  %v1952_v24 = vld [vmem:[%s2440_s3 + $0xa0] sm:$0xff]  ;;  %v1951_v28 = vld [vmem:[%s2440_s3 + $0x98] sm:$0xff]  ;;  %v550_v32 = vld [vmem:[%s2247_s14 + $0x8] sm:$0x3] }
  0xd9   : >> { %785 = vmatpush.bf16.msra.mxu2 %v1954_v16  ;;  %v1960_v25 = vld [vmem:[%s2440_s3 + $0xe0] sm:$0xff]  ;;  %v1959_v29 = vld [vmem:[%s2440_s3 + $0xd8] sm:$0xff]  ;;  %v1950_v34 = vld [vmem:[%s2440_s3 + $0x90] sm:$0xff] }
  0xda   : >> { %870 = vmatpush.bf16.msra.mxu3 %v1962_v17  ;;  %v1936_v26 = vld [vmem:[%s2440_s3 + $0x20] sm:$0xff]  ;;  %v1935_v30 = vld [vmem:[%s2440_s3 + $0x18] sm:$0xff]  ;;  %v1958_v36 = vld [vmem:[%s2440_s3 + $0xd0] sm:$0xff] }
  0xdb   : >> { %704 = vmatpush.bf16.msra.mxu1 %v1938_v18  ;;  %v549_v31 = vld [vmem:[%s2247_s14] sm:$0xff]  ;;  %v1934_v37 = vld [vmem:[%s2440_s3 + $0x10] sm:$0xff]  ;;  %v1941_v38 = vld [vmem:[%s2440_s3 + $0x48] sm:$0xff] }
  0xdc   : >> { %644 = vmatpush.bf16.msra.mxu0 %v1945_v19  ;;  %v568_v35 = vpack.c.bf16 %v550_v32, %v549_v31  ;;  %v1949_v39 = vld [vmem:[%s2440_s3 + $0x88] sm:$0xff]  ;;  %v1940_v43 = vld [vmem:[%s2440_s3 + $0x40] sm:$0xff]  ;;  %v1971_v47 = vld [vmem:[%s2440_s3 + $0x138] sm:$0xff]  ;;  %v551_v59 = vpack.c.bf16 %v549_v31, %v549_v31 }
  0xdd   : >> { %786 = vmatpush.bf16.msra.mxu2 %v1953_v20  ;;  %v1957_v41 = vld [vmem:[%s2440_s3 + $0xc8] sm:$0xff]  ;;  %v1948_v44 = vld [vmem:[%s2440_s3 + $0x80] sm:$0xff]  ;;  %v1987_v48 = vld [vmem:[%s2440_s3 + $0x1b8] sm:$0xff] }
  0xde   : >> { %871 = vmatpush.bf16.msra.mxu3 %v1961_v21  ;;  %v589_v40 = vshll.u32 %v568_v35, 16  ;;  %v1933_v42 = vld [vmem:[%s2440_s3 + $0x8] sm:$0xff]  ;;  %v587_v45 = vshrl.u32 %v568_v35, 16  ;;  %v1956_v49 = vld [vmem:[%s2440_s3 + $0xc0] sm:$0xff]  ;;  %v1995_v51 = vld [vmem:[%s2440_s3 + $0x1f8] sm:$0xff]  ;;  %v734_v54 = vrot.slane %v568_v35, 1 }
  0xdf   : >> { %705 = vmatpush.bf16.msra.mxu1 %v1937_v22  ;;  %v1932_v50 = vld [vmem:[%s2440_s3] sm:$0xff]  ;;  %v1979_v52 = vld [vmem:[%s2440_s3 + $0x178] sm:$0xff]  ;;  %v1623_v53 = vld [vmem:[%s2247_s14 + $0x10] sm:$0xff] }
  0xe0   : >> { %645 = vmatpush.bf16.msra.mxu0 %v1944_v23  ;;  %v591_v46 = vrot.slane %v589_v40, 1  ;;  %v1970_v56 = vld [vmem:[%s2440_s3 + $0x130] sm:$0xff]  ;;  %v803_v58 = vpack.c.bf16 %v1623_v53, %v1623_v53  ;;  %v1969_v62 = vld [vmem:[%s2440_s3 + $0x128] sm:$0xff]  ;;  %v1968_v2 = vld [vmem:[%s2440_s3 + $0x120] sm:$0xff] }
  0xe1   : >> { %787 = vmatpush.bf16.msra.mxu2 %v1952_v24  ;;  %v1986_v57 = vld [vmem:[%s2440_s3 + $0x1b0] sm:$0xff]  ;;  %v1985_v63 = vld [vmem:[%s2440_s3 + $0x1a8] sm:$0xff]  ;;  %v1984_v3 = vld [vmem:[%s2440_s3 + $0x1a0] sm:$0xff] }
  0xe2   : >> { %872 = vmatpush.bf16.msra.mxu3 %v1960_v25  ;;  %v592_v55 = vor.u32 %v591_v46, %v587_v45  ;;  %v1994_v60 = vld [vmem:[%s2440_s3 + $0x1f0] sm:$0xff]  ;;  %v1993_v0 = vld [vmem:[%s2440_s3 + $0x1e8] sm:$0xff]  ;;  %v1992_v4 = vld [vmem:[%s2440_s3 + $0x1e0] sm:$0xff] }
  0xe3   : >> { %706 = vmatpush.bf16.msra.mxu1 %v1936_v26  ;;  %v1978_v61 = vld [vmem:[%s2440_s3 + $0x170] sm:$0xff]  ;;  %v1977_v1 = vld [vmem:[%s2440_s3 + $0x168] sm:$0xff]  ;;  %v1976_v5 = vld [vmem:[%s2440_s3 + $0x160] sm:$0xff] }
  0xe4   : >> { %646 = vmatpush.bf16.msra.mxu0 %v1943_v27  ;;  %v1967_v6 = vld [vmem:[%s2440_s3 + $0x118] sm:$0xff]  ;;  %v1770_v11 = vld [vmem:[%s2247_s14 + $0x20] sm:$0xff]  ;;  %v1771_v12 = vld [vmem:[%s2247_s14 + $0x28] sm:$0x3] }
  0xe5   : >> { %788 = vmatpush.bf16.msra.mxu2 %v1951_v28  ;;  %v1983_v7 = vld [vmem:[%s2440_s3 + $0x198] sm:$0xff]  ;;  %v1966_v14 = vld [vmem:[%s2440_s3 + $0x110] sm:$0xff]  ;;  %v2357_v16 = vpack.c.bf16 %v1771_v12, %v1770_v11  ;;  %v1965_v20 = vld [vmem:[%s2440_s3 + $0x108] sm:$0xff]  ;;  %v1058_v35 = vpack.c.bf16 %v1770_v11, %v1770_v11 }
  0xe6   : >> { %873 = vmatpush.bf16.msra.mxu3 %v1959_v29  ;;  %v1624_v8 = vld [vmem:[%s2247_s14 + $0x18] sm:$0x3]  ;;  %v1982_v15 = vld [vmem:[%s2440_s3 + $0x190] sm:$0xff]  ;;  %v1981_v21 = vld [vmem:[%s2440_s3 + $0x188] sm:$0xff] }
  0xe7   : >> { %707 = vmatpush.bf16.msra.mxu1 %v1935_v30  ;;  %v1991_v9 = vld [vmem:[%s2440_s3 + $0x1d8] sm:$0xff]  ;;  %v883_v13 = vpack.c.bf16 %v1624_v8, %v1623_v53  ;;  %v1990_v17 = vld [vmem:[%s2440_s3 + $0x1d0] sm:$0xff]  ;;  %v1159_v22 = vshll.u32 %v2357_v16, 16  ;;  %v1989_v23 = vld [vmem:[%s2440_s3 + $0x1c8] sm:$0xff]  ;;  %v1157_v30 = vshrl.u32 %v2357_v16, 16 }
  0xe8   : >> { %647 = vmatpush.bf16.msra.mxu0 %v1942_v33  ;;  %v1975_v10 = vld [vmem:[%s2440_s3 + $0x158] sm:$0xff]  ;;  %v1974_v18 = vld [vmem:[%s2440_s3 + $0x150] sm:$0xff]  ;;  %v1973_v24 = vld [vmem:[%s2440_s3 + $0x148] sm:$0xff] }
  0xe9   : >> { %789 = vmatpush.bf16.msra.mxu2 %v1950_v34  ;;  %v904_v19 = vshll.u32 %v883_v13, 16  ;;  %v902_v25 = vshrl.u32 %v883_v13, 16  ;;  %v1964_v27 = vld [vmem:[%s2440_s3 + $0x100] sm:$0xff]  ;;  %v2003_v29 = vld [vmem:[%s2440_s3 + $0x238] sm:$0xff]  ;;  %v1161_v31 = vrot.slane %v1159_v22, 1  ;;  %v989_v40 = vrot.slane %v883_v13, 1 }
  0xea   : >> { %874 = vmatpush.bf16.msra.mxu3 %v1958_v36  ;;  %v1980_v28 = vld [vmem:[%s2440_s3 + $0x180] sm:$0xff] }
  0xeb   : >> { %708 = vmatpush.bf16.msra.mxu1 %v1934_v37  ;;  %v906_v26 = vrot.slane %v904_v19, 1  ;;  %v1988_v32 = vld [vmem:[%s2440_s3 + $0x1c0] sm:$0xff]  ;;  %v2002_v37 = vld [vmem:[%s2440_s3 + $0x230] sm:$0xff] }
  0xec   : >> { %648 = vmatpush.bf16.msra.mxu0 %v1941_v38  ;;  %v1972_v33 = vld [vmem:[%s2440_s3 + $0x140] sm:$0xff]  ;;  %v1162_v38 = vor.u32 %v1161_v31, %v1157_v30 }
  0xed   : >> { %790 = vmatpush.bf16.msra.mxu2 %v1949_v39  ;;  %v1313_v34 = vld [vmem:[%s2441_s4] sm:$0xf]  ;;  %v907_v36 = vor.u32 %v906_v26, %v902_v25 }
  0xee   : >> { %875 = vmatpush.bf16.msra.mxu3 %v1957_v41  ;;  %v1332_v39 = vsel %vm303_vm0, %v1313_v34, 0  ;;  %v1921_v41 = vld [vmem:[%s1408_s9 + $0x8] sm:$0xf]  ;;  %v2000_v45 = vld [vmem:[%s2440_s3 + $0x220] sm:$0xff] }
  0xef   : >> { %709 = vmatpush.bf16.msra.mxu1 %v1933_v42  ;;  %v2004_v42 = vld [vmem:[%s1408_s9 + $0x8] sm:$0x10]  ;;  %v1996_v53 = vld [vmem:[%s2440_s3 + $0x200] sm:$0xff] }
  0xf0   : >> { %649 = vmatpush.bf16.msra.mxu0 %v1940_v43  ;;  %v2001_v43 = vld [vmem:[%s2440_s3 + $0x228] sm:$0xff] }
  0xf1   : >> { %791 = vmatpush.bf16.msra.mxu2 %v1948_v44  ;;  %v1922_v44 = vor.u32 %v2004_v42, %v1921_v41 }
  0xf2   : >> { %876 = vmatpush.bf16.msra.mxu3 %v1956_v49 }
  0xf3   : >> { %710 = vmatpush.bf16.msra.mxu1 %v1932_v50  ;;  %650 = vmatmul.bf16.vlgmr.msra.gmra.mxu0 %v592_v55  ;;  %v1322_v46 = vshll.u32 %v1922_v44, 16  ;;  %v1998_v50 = vld [vmem:[%s2440_s3 + $0x210] sm:$0xff] }
  0xf4   : >> { %957 = vmatpush.bf16.msrb.mxu0 %v1971_v47  ;;  %792 = vmatmul.bf16.vlgmr.msra.gmra.mxu2 %v734_v54  ;;  %v1999_v47 = vld [vmem:[%s2440_s3 + $0x218] sm:$0xff]  ;;  %v1244_v54 = vrot.slane %v2357_v16, 1 }
  0xf5   : >> { %1124 = vmatpush.bf16.msrb.mxu2 %v1987_v48  ;;  %877 = vmatmul.bf16.vlgmr.msra.gmra.mxu3 %v803_v58  ;;  %v1320_v48 = vshrl.u32 %v1922_v44, 16  ;;  %v1324_v49 = vrot.slane %v1322_v46, 1 }
  0xf6   : >> { %1212 = vmatpush.bf16.msrb.mxu3 %v1995_v51  ;;  %711 = vmatmul.bf16.vlgmr.msra.gmra.mxu1 %v551_v59 }
  0xf7   : >> { %1039 = vmatpush.bf16.msrb.mxu1 %v1979_v52  ;;  %v1325_v51 = vor.u32 %v1324_v49, %v1320_v48  ;;  %v1997_v52 = vld [vmem:[%s2440_s3 + $0x208] sm:$0xff] }
  0xf8   : >> { %958 = vmatpush.bf16.msrb.mxu0 %v1970_v56 }
  0xf9   : >> { %1125 = vmatpush.bf16.msrb.mxu2 %v1986_v57 }
  0xfa   : >> { %1213 = vmatpush.bf16.msrb.mxu3 %v1994_v60 }
  0xfb   : >> { %1040 = vmatpush.bf16.msrb.mxu1 %v1978_v61 }
  0xfc   : >> { %959 = vmatpush.bf16.msrb.mxu0 %v1969_v62 }
  0xfd   : >> { %1126 = vmatpush.bf16.msrb.mxu2 %v1985_v63 }
  0xfe   : >> { %1214 = vmatpush.bf16.msrb.mxu3 %v1993_v0 }
  0xff   : >> { %1041 = vmatpush.bf16.msrb.mxu1 %v1977_v1 }
 0x100   : >> { %960 = vmatpush.bf16.msrb.mxu0 %v1968_v2 }
 0x101   : >> { %1127 = vmatpush.bf16.msrb.mxu2 %v1984_v3 }
 0x102   : >> { %1215 = vmatpush.bf16.msrb.mxu3 %v1992_v4 }
 0x103   : >> { %1042 = vmatpush.bf16.msrb.mxu1 %v1976_v5 }
 0x104   : >> { %961 = vmatpush.bf16.msrb.mxu0 %v1967_v6 }
 0x105   : >> { %1128 = vmatpush.bf16.msrb.mxu2 %v1983_v7 }
 0x106   : >> { %1216 = vmatpush.bf16.msrb.mxu3 %v1991_v9 }
 0x107   : >> { %1043 = vmatpush.bf16.msrb.mxu1 %v1975_v10 }
 0x108   : >> { %962 = vmatpush.bf16.msrb.mxu0 %v1966_v14 }
 0x109   : >> { %1129 = vmatpush.bf16.msrb.mxu2 %v1982_v15 }
 0x10a   : >> { %1217 = vmatpush.bf16.msrb.mxu3 %v1990_v17 }
 0x10b   : >> { %1044 = vmatpush.bf16.msrb.mxu1 %v1974_v18  ;;  %v2032_v18 = vld [vmem:[%s2442_s5] ss:$0 sm:$0xff] }
 0x10c   : >> { %963 = vmatpush.bf16.msrb.mxu0 %v1965_v20 }
 0x10d   : >> { %1130 = vmatpush.bf16.msrb.mxu2 %v1981_v21 }
 0x10e   : >> { %1218 = vmatpush.bf16.msrb.mxu3 %v1989_v23 }
 0x10f   : >> { %1045 = vmatpush.bf16.msrb.mxu1 %v1973_v24 }
 0x110   : >> { %964 = vmatpush.bf16.msrb.mxu0 %v1964_v27 }
 0x111   : >> { %1131 = vmatpush.bf16.msrb.mxu2 %v1980_v28 }
 0x112   : >> { %1219 = vmatpush.bf16.msrb.mxu3 %v1988_v32 }
 0x113   : >> { %1046 = vmatpush.bf16.msrb.mxu1 %v1972_v33  ;;  %965 = vmatmul.bf16.vlgmr.msrb.gmra.mxu0 %v907_v36 }
 0x114   : >> { %1294 = vmatpush.bf16.msra.mxu0 %v2003_v29  ;;  %1132 = vmatmul.bf16.vlgmr.msrb.gmra.mxu2 %v1058_v35 }
 0x115   : >> { %1220 = vmatmul.bf16.vlgmr.msrb.gmra.mxu3 %v1162_v38 }
 0x116   : >> { %1047 = vmatmul.bf16.vlgmr.msrb.gmra.mxu1 %v989_v40 }
 0x117   : >> { %1341 = vmatpush.bf16.msra.mxu1 %v1332_v39 }
 0x118   : >> { %1295 = vmatpush.bf16.msra.mxu0 %v2002_v37 }
 0x11c   : >> { %1296 = vmatpush.bf16.msra.mxu0 %v2001_v43 }
 0x120   : >> { %1297 = vmatpush.bf16.msra.mxu0 %v2000_v45 }
 0x124   : >> { %1298 = vmatpush.bf16.msra.mxu0 %v1999_v47 }
 0x126   : >> { %1923 = vmatmul.msk.bf16.vlgmr.msra.gmra.mxu1 %vm299_vm1, %v1325_v51 }
 0x128   : >> { %1299 = vmatpush.bf16.msra.mxu0 %v1998_v50 }
 0x12c   : >> { %1300 = vmatpush.bf16.msra.mxu0 %v1997_v52 }
 0x130   : >> { %1301 = vmatpush.bf16.msra.mxu0 %v1996_v53 }
 0x133   : >> { %1302 = vmatmul.bf16.vlgmr.msra.gmra.mxu0 %v1244_v54 }
 0x170   : >> { %v651_v55 = vpop.f32.mrf.mxu0 }
 0x173   : >> { %v712_v56 = vpop.f32.mrf.mxu1 }
 0x174   : >> { %v713_v1 = vadd.f32 %v712_v56, %v651_v55 }
 0x177   : >> { %v793_v57 = vpop.f32.mrf.mxu2 }
 0x178   : >> { %v878_v58 = vpop.f32.mrf.mxu3  ;;  %v653_v59 = vpop.f32.mrf.mxu0  ;;  %v797_v3 = vadd.f32 %v793_v57, %v713_v1 }
 0x17a   : >> { %v882_v7 = vadd.f32 %v878_v58, %v797_v3 }
 0x17b   : >> { %v714_v60 = vpop.f32.mrf.mxu1 }
 0x17f   : >> { %v795_v61 = vpop.f32.mrf.mxu2 }
 0x180   : >> { %v880_v62 = vpop.f32.mrf.mxu3 }
 0x190   : >> { %v966_v63 = vpop.f32.mrf.mxu0 }
 0x191   : >> { %v970_v9 = vadd.f32 %v966_v63, %v882_v7 }
 0x193   : >> { %v1048_v0 = vpop.f32.mrf.mxu1 }
 0x194   : >> { %v1052_v12 = vadd.f32 %v1048_v0, %v970_v9 }
 0x197   : >> { %v1133_v2 = vpop.f32.mrf.mxu2 }
 0x198   : >> { %v1221_v4 = vpop.f32.mrf.mxu3  ;;  %v968_v5 = vpop.f32.mrf.mxu0  ;;  %v1137_v13 = vadd.f32 %v1133_v2, %v1052_v12 }
 0x19a   : >> { %v1225_v15 = vadd.f32 %v1221_v4, %v1137_v13 }
 0x19b   : >> { %v1050_v6 = vpop.f32.mrf.mxu1 }
 0x19f   : >> { %v1135_v8 = vpop.f32.mrf.mxu2 }
 0x1a0   : >> { %v1223_v10 = vpop.f32.mrf.mxu3 }
 0x1a3   : >> { %v1343_v11 = vpop.f32.mrf.mxu1 }
 0x1ab   : >> { %v1345_v14 = vpop.f32.mrf.mxu1 }
 0x1b0   : >> { %v1303_v16 = vpop.f32.mrf.mxu0 }
 0x1b1   : >> { %v1307_v17 = vadd.f32 %v1303_v16, %v1225_v15 }
 0x1b3   : >> { %v1347_v19 = vadd.f32 %v1343_v11, %v1307_v17 }
 0x1b5   : >> { %v1352_v20 = vadd.f32 %v2032_v18, %v1347_v19  ;;  %545 = sbr.rel (!%p543_p5) target bundleno = 211 (0xd3), region = 124 }
 0x1b7   : >> { %v1353_v21 = vmax.f32 %v1352_v20, 0.0 }
 0x1b8   : >> { %v1305_v22 = vpop.f32.mrf.mxu0 }
 0x1b9   : >> { %1356 = vst [vmem:[%s1355_s29] sm:$0xff] %v1353_v21 }
 0x1ba PF: > { %s16_s21 = sadd.s32 1, %s2047_s21  }
 0x1bb   : > { %p13_p6 = scmp.ge.s32.totalorder %s16_s21, 4  }
 0x1bd   :  { %15 = sbr.rel (!%p13_p6) target bundleno = 1 (0x1), region = 135 }

// kernel: fwd.2
= control target key start
LH: loop header
LB: loop body
LE: loop exit
PB: predicated region body
PF: predicated region fallthrough
CT: control target
= control target key end

     0   :  { %s2102_s21 = smov 0   ;;  %s2449_s0 = inlined_call_operand.vmem [shape: bf16[2,36,9,4], index: 0, kind: input, shape index: {}]   ;;  %s2450_s1 = inlined_call_operand.vmem [shape: bf16[9,4,128], index: 1, kind: input, shape index: {}]   ;;  %s2451_s2 = inlined_call_operand.vmem [shape: f32[1,128], index: 2, kind: input, shape index: {}]   ;;  %s2452_s3 = inlined_call_operand.vmem [shape: bf16[9,128,128], index: 3, kind: input, shape index: {}]   ;;  %s2453_s4 = inlined_call_operand.vmem [shape: bf16[4,128], index: 4, kind: input, shape index: {}]   ;;  %s2454_s5 = inlined_call_operand.vmem [shape: f32[1,128], index: 5, kind: input, shape index: {}]   ;;  %s2455_s6 = inlined_call_operand.vmem [shape: f32[2,8,8,128], index: 6, kind: output, shape index: {}]  }
   0x1 LB: > { %s1455_s22 = sadd.s32 4294967295, %s2056_s21   ;;  %p1459_p0 = scmp.ge.s32.totalorder %s2056_s21, 1  ;;  %s2056_s21 = sphi %s2102_s21, %s16_s21  }
   0x2   : > { %p212_p1 = scmp.lt.s32.totalorder %s2056_s21, 3 }
   0x4   : > { %p213_p2 = pnand %p1459_p0, %p212_p1 }
   0x5   : > { %p242_p3 = scmp.lt.s32.totalorder (!%p213_p2), %s1455_s22, 1  ;;  %s2120_s7 = smov (!%p213_p2), 0  }
   0x6   : > { %216 = sbr.rel (%p213_p2) target bundleno = 436 (0x1b4), region = 44 }
   0xb   : > { %v2066_v0 = vmov 0.0   ;;  %s2457_s22 = smov (!%p242_p3, %s1455_s22), 1 }
   0xc   : > { %253 = vst [vmem:[#allocation2] sm:$0xff] %v2066_v0  ;;  %s2014_s23 = smul.u32 288, %s2457_s22  ;;  %s1937_s24 = sshll.u32 %s2457_s22, 6 }
   0xd   : > { %254 = vst [vmem:[#allocation2 + $0x8] sm:$0x3] %v2066_v0  ;;  %s2113_s27 = scalar_lea.vmem %s2455_s6, %s1937_s24 }
   0xe   : > { %255 = vst [vmem:[#allocation2 + $0x10] sm:$0xff] %v2066_v0  ;;  %s2118_s30 = scalar_lea.vmem %s2449_s0, %s2014_s23 }
   0xf   : > { %256 = vst [vmem:[#allocation2 + $0x18] sm:$0x3] %v2066_v0 }
  0x10   : > { %257 = vst [vmem:[#allocation2 + $0x20] sm:$0xff] %v2066_v0 }
  0x11   : > { %258 = vst [vmem:[#allocation2 + $0x28] sm:$0x3] %v2066_v0 }
  0x12   : > { %259 = vst [vmem:[#allocation2 + $0x30] sm:$0xff] %v2066_v0 }
  0x13   : > { %260 = vst [vmem:[#allocation2 + $0x38] sm:$0x3] %v2066_v0 }
  0x14   : > { %261 = vst [vmem:[#allocation2 + $0x40] sm:$0xff] %v2066_v0 }
  0x15   : > { %262 = vst [vmem:[#allocation2 + $0x48] sm:$0x3] %v2066_v0 }
  0x16   : > { %263 = vst [vmem:[#allocation2 + $0x50] sm:$0xff] %v2066_v0 }
  0x17   : > { %264 = vst [vmem:[#allocation2 + $0x58] sm:$0x3] %v2066_v0 }
  0x18   : > { %265 = vst [vmem:[#allocation2 + $0x60] sm:$0xff] %v2066_v0 }
  0x19   : > { %266 = vst [vmem:[#allocation2 + $0x68] sm:$0x3] %v2066_v0 }
  0x1a   : > { %267 = vst [vmem:[#allocation2 + $0x70] sm:$0xff] %v2066_v0 }
  0x1b   : > { %268 = vst [vmem:[#allocation2 + $0x78] sm:$0x3] %v2066_v0 }
  0x1c   : > { %269 = vst [vmem:[#allocation2 + $0x80] sm:$0xff] %v2066_v0 }
  0x1d   : > { %270 = vst [vmem:[#allocation2 + $0x88] sm:$0x3] %v2066_v0 }
  0x1e   : > { %271 = vst [vmem:[#allocation2 + $0x90] sm:$0xff] %v2066_v0 }
  0x1f   : > { %272 = vst [vmem:[#allocation2 + $0x98] sm:$0x3] %v2066_v0 }
  0x20 LB: >> { %v1467_v1 = vld [vmem:[%s2450_s1 + $0x2] sm:$0x3]  ;;  %vm296_vm0 = vcmask 1041408   ;;  %v284_v2 = vld [vmem:[%s2450_s1] sm:$0x3]  ;;  %s1938_s16 = sshll.u32 %s2060_s7, 3  ;;  %s2060_s7 = sphi %s2120_s7, %s278_s7  }
  0x21   : >> { %v298_v3 = vsel %vm296_vm0, %v1467_v1, 0  ;;  %v317_v4 = vsel %vm296_vm0, %v284_v2, 0  ;;  %v1479_v5 = vld [vmem:[%s2450_s1 + $0x6] sm:$0x3]  ;;  %v1483_v6 = vld [vmem:[%s2450_s1 + $0x8] sm:$0x3]  ;;  %s2146_s19 = scalar_lea.vmem %s2118_s30, %s1938_s16 }
  0x22   : >> { %307 = vmatpush.bf16.msra.mxu0 %v298_v3  ;;  %326 = vmatpush.bf16.msra.mxu1 %v317_v4  ;;  %v378_v7 = vsel %vm296_vm0, %v1479_v5, 0  ;;  %vm292_vm1 = vcmask 31744   ;;  %v405_v8 = vsel %vm296_vm0, %v1483_v6, 0  ;;  %v1470_v9 = vld [vmem:[%s2450_s1 + $0x4] sm:$0x3]  ;;  %s1506_s10 = sshll.u32 %s2060_s7, 4 }
  0x23   : >> { %387 = vmatpush.bf16.msra.mxu3 %v378_v7  ;;  %v350_v10 = vsel %vm296_vm0, %v1470_v9, 0  ;;  %v1494_v11 = vld [vmem:[%s2450_s1 + $0xc] sm:$0x3]  ;;  %v1498_v12 = vld [vmem:[%s2450_s1 + $0xe] sm:$0x3]  ;;  %s1406_s11 = scalar_lea.vmem [#allocation2], %s1506_s10 }
  0x24   : >> { %v1466_v13 = vld [vmem:[%s2146_s19 + $0x48] sm:$0xf]  ;;  %v282_v14 = vld [vmem:[%s2146_s19] sm:$0xf]  ;;  %v1477_v15 = vld [vmem:[%s2146_s19 + $0x90] sm:$0xf]  ;;  %359 = vmatpush.bf16.msra.mxu2 %v350_v10 }
  0x25   : >> { %1468 = vmatmul.msk.bf16.vlgmr.msra.gmra.mxu0 %vm292_vm1, %v1466_v13  ;;  %1469 = vmatmul.msk.bf16.vlgmr.msra.gmra.mxu1 %vm292_vm1, %v282_v14  ;;  %v1473_v16 = vld [vmem:[%s2146_s19] sm:$0xf]  ;;  %v1939_v17 = vld [vmem:[%s2146_s19] sm:$0x10]  ;;  %v467_v18 = vsel %vm296_vm0, %v1494_v11, 0  ;;  %v494_v19 = vsel %vm296_vm0, %v1498_v12, 0 }
  0x26   : >> { %414 = vmatpush.bf16.msrb.mxu0 %v405_v8  ;;  %1480 = vmatmul.msk.bf16.vlgmr.msra.gmra.mxu3 %vm292_vm1, %v1477_v15  ;;  %v1474_v20 = vor.u32 %v1939_v17, %v1473_v16  ;;  %v1485_v21 = vld [vmem:[%s2450_s1 + $0xa] sm:$0x3]  ;;  %v1500_v22 = vld [vmem:[%s2450_s1 + $0x10] sm:$0x3]  ;;  %v1940_v28 = vld [vmem:[%s2146_s19 + $0x90] sm:$0x10] }
  0x27   : >> { %503 = vmatpush.bf16.msrb.mxu3 %v494_v19  ;;  %v439_v23 = vsel %vm296_vm0, %v1485_v21, 0  ;;  %v528_v24 = vsel %vm296_vm0, %v1500_v22, 0  ;;  %v1488_v25 = vld [vmem:[%s2146_s19 + $0x90] sm:$0xf]  ;;  %v1482_v36 = vld [vmem:[%s2146_s19 + $0xd8] sm:$0xf] }
  0x28   : >> { %476 = vmatpush.bf16.msrb.mxu2 %v467_v18  ;;  %v340_v26 = vshrl.u32 %v1474_v20, 16  ;;  %v342_v27 = vshll.u32 %v1474_v20, 16  ;;  %448 = vmatpush.bf16.msrb.mxu1 %v439_v23  ;;  %v1489_v29 = vor.u32 %v1940_v28, %v1488_v25  ;;  %v1503_v37 = vld [vmem:[%s2146_s19 + $0x8] sm:$0xf]  ;;  %v1941_v38 = vld [vmem:[%s2146_s19 + $0x8] sm:$0x10] }
  0x29   : >> { %v1497_v39 = vld [vmem:[%s2146_s19 + $0x50] sm:$0xf]  ;;  %v1504_v40 = vor.u32 %v1941_v38, %v1503_v37  ;;  %v1492_v42 = vld [vmem:[%s2146_s19 + $0x8] sm:$0xf]  ;;  %v2040_v5 = vld [vmem:[%s2451_s2] ss:$0 sm:$0xff] }
  0x2a   : >> { %537 = vmatpush.bf16.msra.mxu0 %v528_v24  ;;  %v344_v30 = vrot.slane %v342_v27, 1  ;;  %v431_v31 = vshll.u32 %v1489_v29, 16  ;;  %v429_v33 = vshrl.u32 %v1489_v29, 16  ;;  %s278_s7 = sadd.s32 1, %s2060_s7  }
  0x2b   : >> { %v520_v41 = vshll.u32 %v1504_v40, 16  ;;  %v518_v43 = vshrl.u32 %v1504_v40, 16  ;;  %p275_p4 = scmp.ge.s32.totalorder %s278_s7, 8  }
  0x2c   : >> { %v345_v32 = vor.u32 %v344_v30, %v340_v26  ;;  %v433_v34 = vrot.slane %v431_v31, 1  ;;  %s2193_s12 = smov (%p275_p4), 0  }
  0x2d   : >> { %v522_v44 = vrot.slane %v520_v41, 1 }
  0x2e   : >> { %1475 = vmatmul.msk.bf16.vlgmr.msra.gmra.mxu2 %vm292_vm1, %v345_v32  ;;  %v434_v35 = vor.u32 %v433_v34, %v429_v33 }
  0x2f   : >> { %v523_v45 = vor.u32 %v522_v44, %v518_v43 }
  0x35   : >> { %1484 = vmatmul.msk.bf16.vlgmr.msrb.gmra.mxu0 %vm292_vm1, %v1482_v36  ;;  %1490 = vmatmul.msk.bf16.vlgmr.msrb.gmra.mxu1 %vm292_vm1, %v434_v35 }
  0x36   : >> { %1499 = vmatmul.msk.bf16.vlgmr.msrb.gmra.mxu3 %vm292_vm1, %v1497_v39 }
  0x3e   : >> { %1495 = vmatmul.msk.bf16.vlgmr.msrb.gmra.mxu2 %vm292_vm1, %v1492_v42 }
  0x45   : >> { %1505 = vmatmul.msk.bf16.vlgmr.msra.gmra.mxu0 %vm292_vm1, %v523_v45 }
  0xa2   : >> { %v309_v46 = vpop.f32.mrf.mxu0  ;;  %v328_v47 = vpop.f32.mrf.mxu1 }
  0xa3   : >> { %v329_v53 = vadd.f32 %v328_v47, %v309_v46 }
  0xa9   : >> { %v389_v48 = vpop.f32.mrf.mxu3 }
  0xaa   : >> { %v311_v49 = vpop.f32.mrf.mxu0  ;;  %v330_v50 = vpop.f32.mrf.mxu1 }
  0xb1   : >> { %v361_v51 = vpop.f32.mrf.mxu2  ;;  %v391_v52 = vpop.f32.mrf.mxu3 }
  0xb2   : >> { %v416_v54 = vpop.f32.mrf.mxu0  ;;  %v450_v55 = vpop.f32.mrf.mxu1  ;;  %v365_v56 = vadd.f32 %v361_v51, %v329_v53 }
  0xb4   : >> { %v393_v57 = vadd.f32 %v389_v48, %v365_v56 }
  0xb6   : >> { %v420_v62 = vadd.f32 %v416_v54, %v393_v57 }
  0xb8   : >> { %v454_v63 = vadd.f32 %v450_v55, %v420_v62 }
  0xb9   : >> { %v363_v58 = vpop.f32.mrf.mxu2  ;;  %v505_v59 = vpop.f32.mrf.mxu3 }
  0xba   : >> { %v418_v60 = vpop.f32.mrf.mxu0  ;;  %v452_v61 = vpop.f32.mrf.mxu1 }
  0xc1   : >> { %v478_v0 = vpop.f32.mrf.mxu2  ;;  %v507_v1 = vpop.f32.mrf.mxu3 }
  0xc2   : >> { %v482_v2 = vadd.f32 %v478_v0, %v454_v63  ;;  %v539_v3 = vpop.f32.mrf.mxu0 }
  0xc4   : >> { %v509_v4 = vadd.f32 %v505_v59, %v482_v2 }
  0xc6   : >> { %v543_v6 = vadd.f32 %v539_v3, %v509_v4 }
  0xc8   : >> { %v548_v7 = vadd.f32 %v2040_v5, %v543_v6  ;;  %277 = sbr.rel (!%p275_p4) target bundleno = 32 (0x20), region = 116 }
  0xc9   : >> { %v480_v8 = vpop.f32.mrf.mxu2 }
  0xca   : >> { %v549_v9 = vmax.f32 %v548_v7, 0.0  ;;  %v541_v10 = vpop.f32.mrf.mxu0 }
  0xcc   : >> { %1507 = vst [vmem:[%s1406_s11 + $0x11] sm:$0xff] %v549_v9 }
  0xcd LB: >> { %v1957_v11 = vld [vmem:[%s2452_s3 + $0x78] sm:$0xff]  ;;  %v1956_v15 = vld [vmem:[%s2452_s3 + $0x70] sm:$0xff]  ;;  %v1955_v19 = vld [vmem:[%s2452_s3 + $0x68] sm:$0xff]  ;;  %s1508_s17 = sshll.u32 %s2064_s12, 4  ;;  %s1931_s7 = sshll.u32 %s2064_s12, 3  ;;  %s2064_s12 = sphi %s2193_s12, %s558_s12  }
  0xce   : >> { %v1965_v12 = vld [vmem:[%s2452_s3 + $0xb8] sm:$0xff]  ;;  %654 = vmatpush.bf16.msra.mxu0 %v1957_v11  ;;  %v1964_v16 = vld [vmem:[%s2452_s3 + $0xb0] sm:$0xff]  ;;  %v1963_v20 = vld [vmem:[%s2452_s3 + $0xa8] sm:$0xff]  ;;  %s2259_s14 = scalar_lea.vmem [#allocation2], %s1508_s17  ;;  %s1417_s19 = scalar_lea.vmem %s2118_s30, %s1931_s7 }
  0xcf   : >> { %v1973_v13 = vld [vmem:[%s2452_s3 + $0xf8] sm:$0xff]  ;;  %796 = vmatpush.bf16.msra.mxu2 %v1965_v12  ;;  %v1972_v17 = vld [vmem:[%s2452_s3 + $0xf0] sm:$0xff]  ;;  %v1971_v21 = vld [vmem:[%s2452_s3 + $0xe8] sm:$0xff]  ;;  %s558_s12 = sadd.s32 1, %s2064_s12  }
  0xd0   : >> { %v1949_v14 = vld [vmem:[%s2452_s3 + $0x38] sm:$0xff]  ;;  %881 = vmatpush.bf16.msra.mxu3 %v1973_v13  ;;  %v1948_v18 = vld [vmem:[%s2452_s3 + $0x30] sm:$0xff]  ;;  %v1947_v22 = vld [vmem:[%s2452_s3 + $0x28] sm:$0xff]  ;;  %p555_p5 = scmp.ge.s32.totalorder %s558_s12, 8  }
  0xd1   : >> { %715 = vmatpush.bf16.msra.mxu1 %v1949_v14  ;;  %v1954_v23 = vld [vmem:[%s2452_s3 + $0x60] sm:$0xff]  ;;  %v1953_v27 = vld [vmem:[%s2452_s3 + $0x58] sm:$0xff]  ;;  %v1952_v33 = vld [vmem:[%s2452_s3 + $0x50] sm:$0xff] }
  0xd2   : >> { %655 = vmatpush.bf16.msra.mxu0 %v1956_v15  ;;  %v1962_v24 = vld [vmem:[%s2452_s3 + $0xa0] sm:$0xff]  ;;  %v1961_v28 = vld [vmem:[%s2452_s3 + $0x98] sm:$0xff]  ;;  %v1960_v34 = vld [vmem:[%s2452_s3 + $0x90] sm:$0xff] }
  0xd3   : >> { %797 = vmatpush.bf16.msra.mxu2 %v1964_v16  ;;  %v1970_v25 = vld [vmem:[%s2452_s3 + $0xe0] sm:$0xff]  ;;  %v1969_v29 = vld [vmem:[%s2452_s3 + $0xd8] sm:$0xff]  ;;  %v562_v32 = vld [vmem:[%s2259_s14 + $0x8] sm:$0x3] }
  0xd4   : >> { %882 = vmatpush.bf16.msra.mxu3 %v1972_v17  ;;  %v1946_v26 = vld [vmem:[%s2452_s3 + $0x20] sm:$0xff]  ;;  %v1945_v30 = vld [vmem:[%s2452_s3 + $0x18] sm:$0xff]  ;;  %v1968_v36 = vld [vmem:[%s2452_s3 + $0xd0] sm:$0xff] }
  0xd5   : >> { %716 = vmatpush.bf16.msra.mxu1 %v1948_v18  ;;  %v561_v31 = vld [vmem:[%s2259_s14] sm:$0xff]  ;;  %v1944_v37 = vld [vmem:[%s2452_s3 + $0x10] sm:$0xff]  ;;  %v1951_v38 = vld [vmem:[%s2452_s3 + $0x48] sm:$0xff] }
  0xd6   : >> { %656 = vmatpush.bf16.msra.mxu0 %v1955_v19  ;;  %v580_v35 = vpack.c.bf16 %v562_v32, %v561_v31  ;;  %v1959_v39 = vld [vmem:[%s2452_s3 + $0x88] sm:$0xff]  ;;  %v1950_v43 = vld [vmem:[%s2452_s3 + $0x40] sm:$0xff]  ;;  %v1981_v47 = vld [vmem:[%s2452_s3 + $0x138] sm:$0xff]  ;;  %v563_v59 = vpack.c.bf16 %v561_v31, %v561_v31 }
  0xd7   : >> { %798 = vmatpush.bf16.msra.mxu2 %v1963_v20  ;;  %v1967_v41 = vld [vmem:[%s2452_s3 + $0xc8] sm:$0xff]  ;;  %v1958_v44 = vld [vmem:[%s2452_s3 + $0x80] sm:$0xff]  ;;  %v1997_v48 = vld [vmem:[%s2452_s3 + $0x1b8] sm:$0xff] }
  0xd8   : >> { %883 = vmatpush.bf16.msra.mxu3 %v1971_v21  ;;  %v601_v40 = vshll.u32 %v580_v35, 16  ;;  %v1943_v42 = vld [vmem:[%s2452_s3 + $0x8] sm:$0xff]  ;;  %v599_v45 = vshrl.u32 %v580_v35, 16  ;;  %v1966_v49 = vld [vmem:[%s2452_s3 + $0xc0] sm:$0xff]  ;;  %v2005_v51 = vld [vmem:[%s2452_s3 + $0x1f8] sm:$0xff]  ;;  %v746_v54 = vrot.slane %v580_v35, 1 }
  0xd9   : >> { %717 = vmatpush.bf16.msra.mxu1 %v1947_v22  ;;  %v1942_v50 = vld [vmem:[%s2452_s3] sm:$0xff]  ;;  %v1989_v52 = vld [vmem:[%s2452_s3 + $0x178] sm:$0xff]  ;;  %v1638_v53 = vld [vmem:[%s2259_s14 + $0x10] sm:$0xff] }
  0xda   : >> { %657 = vmatpush.bf16.msra.mxu0 %v1954_v23  ;;  %v603_v46 = vrot.slane %v601_v40, 1  ;;  %v1980_v56 = vld [vmem:[%s2452_s3 + $0x130] sm:$0xff]  ;;  %v815_v58 = vpack.c.bf16 %v1638_v53, %v1638_v53  ;;  %v1979_v62 = vld [vmem:[%s2452_s3 + $0x128] sm:$0xff]  ;;  %v1978_v2 = vld [vmem:[%s2452_s3 + $0x120] sm:$0xff] }
  0xdb   : >> { %799 = vmatpush.bf16.msra.mxu2 %v1962_v24  ;;  %v1996_v57 = vld [vmem:[%s2452_s3 + $0x1b0] sm:$0xff]  ;;  %v1995_v63 = vld [vmem:[%s2452_s3 + $0x1a8] sm:$0xff]  ;;  %v1994_v3 = vld [vmem:[%s2452_s3 + $0x1a0] sm:$0xff] }
  0xdc   : >> { %884 = vmatpush.bf16.msra.mxu3 %v1970_v25  ;;  %v604_v55 = vor.u32 %v603_v46, %v599_v45  ;;  %v2004_v60 = vld [vmem:[%s2452_s3 + $0x1f0] sm:$0xff]  ;;  %v2003_v0 = vld [vmem:[%s2452_s3 + $0x1e8] sm:$0xff]  ;;  %v2002_v4 = vld [vmem:[%s2452_s3 + $0x1e0] sm:$0xff] }
  0xdd   : >> { %718 = vmatpush.bf16.msra.mxu1 %v1946_v26  ;;  %v1988_v61 = vld [vmem:[%s2452_s3 + $0x170] sm:$0xff]  ;;  %v1987_v1 = vld [vmem:[%s2452_s3 + $0x168] sm:$0xff]  ;;  %v1986_v5 = vld [vmem:[%s2452_s3 + $0x160] sm:$0xff] }
  0xde   : >> { %658 = vmatpush.bf16.msra.mxu0 %v1953_v27  ;;  %v1977_v6 = vld [vmem:[%s2452_s3 + $0x118] sm:$0xff]  ;;  %v1785_v11 = vld [vmem:[%s2259_s14 + $0x20] sm:$0xff]  ;;  %v1786_v12 = vld [vmem:[%s2259_s14 + $0x28] sm:$0x3] }
  0xdf   : >> { %800 = vmatpush.bf16.msra.mxu2 %v1961_v28  ;;  %v1993_v7 = vld [vmem:[%s2452_s3 + $0x198] sm:$0xff]  ;;  %v1976_v14 = vld [vmem:[%s2452_s3 + $0x110] sm:$0xff]  ;;  %v2369_v16 = vpack.c.bf16 %v1786_v12, %v1785_v11  ;;  %v1975_v20 = vld [vmem:[%s2452_s3 + $0x108] sm:$0xff]  ;;  %v1070_v35 = vpack.c.bf16 %v1785_v11, %v1785_v11 }
  0xe0   : >> { %885 = vmatpush.bf16.msra.mxu3 %v1969_v29  ;;  %v1639_v8 = vld [vmem:[%s2259_s14 + $0x18] sm:$0x3]  ;;  %v1992_v15 = vld [vmem:[%s2452_s3 + $0x190] sm:$0xff]  ;;  %v1991_v21 = vld [vmem:[%s2452_s3 + $0x188] sm:$0xff]  ;;  %s1355_s14 = scalar_lea.vmem %s2113_s27, %s1931_s7 }
  0xe1   : >> { %719 = vmatpush.bf16.msra.mxu1 %v1945_v30  ;;  %v2001_v9 = vld [vmem:[%s2452_s3 + $0x1d8] sm:$0xff]  ;;  %v895_v13 = vpack.c.bf16 %v1639_v8, %v1638_v53  ;;  %v2000_v17 = vld [vmem:[%s2452_s3 + $0x1d0] sm:$0xff]  ;;  %v1171_v22 = vshll.u32 %v2369_v16, 16  ;;  %v1999_v23 = vld [vmem:[%s2452_s3 + $0x1c8] sm:$0xff]  ;;  %v1169_v30 = vshrl.u32 %v2369_v16, 16 }
  0xe2   : >> { %659 = vmatpush.bf16.msra.mxu0 %v1952_v33  ;;  %v1985_v10 = vld [vmem:[%s2452_s3 + $0x158] sm:$0xff]  ;;  %v1984_v18 = vld [vmem:[%s2452_s3 + $0x150] sm:$0xff]  ;;  %v1983_v24 = vld [vmem:[%s2452_s3 + $0x148] sm:$0xff] }
  0xe3   : >> { %801 = vmatpush.bf16.msra.mxu2 %v1960_v34  ;;  %v916_v19 = vshll.u32 %v895_v13, 16  ;;  %v914_v25 = vshrl.u32 %v895_v13, 16  ;;  %v1974_v27 = vld [vmem:[%s2452_s3 + $0x100] sm:$0xff]  ;;  %v2013_v29 = vld [vmem:[%s2452_s3 + $0x238] sm:$0xff]  ;;  %v1173_v31 = vrot.slane %v1171_v22, 1  ;;  %v1001_v40 = vrot.slane %v895_v13, 1 }
  0xe4   : >> { %886 = vmatpush.bf16.msra.mxu3 %v1968_v36  ;;  %v1990_v28 = vld [vmem:[%s2452_s3 + $0x180] sm:$0xff]  ;;  %v1932_v45 = vld [vmem:[%s1417_s19 + $0xd8] sm:$0xf]  ;;  %v2007_v46 = vld [vmem:[%s2452_s3 + $0x208] sm:$0xff] }
  0xe5   : >> { %720 = vmatpush.bf16.msra.mxu1 %v1944_v37  ;;  %v918_v26 = vrot.slane %v916_v19, 1  ;;  %v1998_v32 = vld [vmem:[%s2452_s3 + $0x1c0] sm:$0xff]  ;;  %v2012_v37 = vld [vmem:[%s2452_s3 + $0x230] sm:$0xff] }
  0xe6   : >> { %660 = vmatpush.bf16.msra.mxu0 %v1951_v38  ;;  %v1982_v33 = vld [vmem:[%s2452_s3 + $0x140] sm:$0xff]  ;;  %v1174_v38 = vor.u32 %v1173_v31, %v1169_v30 }
  0xe7   : >> { %802 = vmatpush.bf16.msra.mxu2 %v1959_v39  ;;  %v1325_v34 = vld [vmem:[%s2453_s4] sm:$0x3]  ;;  %v919_v36 = vor.u32 %v918_v26, %v914_v25 }
  0xe8   : >> { %887 = vmatpush.bf16.msra.mxu3 %v1967_v41  ;;  %v1332_v39 = vsel %vm296_vm0, %v1325_v34, 0  ;;  %v2011_v41 = vld [vmem:[%s2452_s3 + $0x228] sm:$0xff]  ;;  %v2041_v12 = vld [vmem:[%s2454_s5] ss:$0 sm:$0xff] }
  0xe9   : >> { %721 = vmatpush.bf16.msra.mxu1 %v1943_v42  ;;  %v2010_v42 = vld [vmem:[%s2452_s3 + $0x220] sm:$0xff] }
  0xea   : >> { %661 = vmatpush.bf16.msra.mxu0 %v1950_v43  ;;  %v2009_v43 = vld [vmem:[%s2452_s3 + $0x218] sm:$0xff] }
  0xeb   : >> { %803 = vmatpush.bf16.msra.mxu2 %v1958_v44  ;;  %v2008_v44 = vld [vmem:[%s2452_s3 + $0x210] sm:$0xff] }
  0xec   : >> { %888 = vmatpush.bf16.msra.mxu3 %v1966_v49 }
  0xed   : >> { %722 = vmatpush.bf16.msra.mxu1 %v1942_v50  ;;  %662 = vmatmul.bf16.vlgmr.msra.gmra.mxu0 %v604_v55 }
  0xee   : >> { %969 = vmatpush.bf16.msrb.mxu0 %v1981_v47  ;;  %804 = vmatmul.bf16.vlgmr.msra.gmra.mxu2 %v746_v54  ;;  %v2006_v47 = vld [vmem:[%s2452_s3 + $0x200] sm:$0xff] }
  0xef   : >> { %1136 = vmatpush.bf16.msrb.mxu2 %v1997_v48  ;;  %889 = vmatmul.bf16.vlgmr.msra.gmra.mxu3 %v815_v58  ;;  %v1256_v48 = vrot.slane %v2369_v16, 1 }
  0xf0   : >> { %1224 = vmatpush.bf16.msrb.mxu3 %v2005_v51  ;;  %723 = vmatmul.bf16.vlgmr.msra.gmra.mxu1 %v563_v59 }
  0xf1   : >> { %1051 = vmatpush.bf16.msrb.mxu1 %v1989_v52 }
  0xf2   : >> { %970 = vmatpush.bf16.msrb.mxu0 %v1980_v56 }
  0xf3   : >> { %1137 = vmatpush.bf16.msrb.mxu2 %v1996_v57 }
  0xf4   : >> { %1225 = vmatpush.bf16.msrb.mxu3 %v2004_v60 }
  0xf5   : >> { %1052 = vmatpush.bf16.msrb.mxu1 %v1988_v61 }
  0xf6   : >> { %971 = vmatpush.bf16.msrb.mxu0 %v1979_v62 }
  0xf7   : >> { %1138 = vmatpush.bf16.msrb.mxu2 %v1995_v63 }
  0xf8   : >> { %1226 = vmatpush.bf16.msrb.mxu3 %v2003_v0 }
  0xf9   : >> { %1053 = vmatpush.bf16.msrb.mxu1 %v1987_v1 }
  0xfa   : >> { %972 = vmatpush.bf16.msrb.mxu0 %v1978_v2 }
  0xfb   : >> { %1139 = vmatpush.bf16.msrb.mxu2 %v1994_v3 }
  0xfc   : >> { %1227 = vmatpush.bf16.msrb.mxu3 %v2002_v4 }
  0xfd   : >> { %1054 = vmatpush.bf16.msrb.mxu1 %v1986_v5 }
  0xfe   : >> { %973 = vmatpush.bf16.msrb.mxu0 %v1977_v6 }
  0xff   : >> { %1140 = vmatpush.bf16.msrb.mxu2 %v1993_v7 }
 0x100   : >> { %1228 = vmatpush.bf16.msrb.mxu3 %v2001_v9 }
 0x101   : >> { %1055 = vmatpush.bf16.msrb.mxu1 %v1985_v10 }
 0x102   : >> { %974 = vmatpush.bf16.msrb.mxu0 %v1976_v14 }
 0x103   : >> { %1141 = vmatpush.bf16.msrb.mxu2 %v1992_v15 }
 0x104   : >> { %1229 = vmatpush.bf16.msrb.mxu3 %v2000_v17 }
 0x105   : >> { %1056 = vmatpush.bf16.msrb.mxu1 %v1984_v18 }
 0x106   : >> { %975 = vmatpush.bf16.msrb.mxu0 %v1975_v20 }
 0x107   : >> { %1142 = vmatpush.bf16.msrb.mxu2 %v1991_v21 }
 0x108   : >> { %1230 = vmatpush.bf16.msrb.mxu3 %v1999_v23 }
 0x109   : >> { %1057 = vmatpush.bf16.msrb.mxu1 %v1983_v24 }
 0x10a   : >> { %976 = vmatpush.bf16.msrb.mxu0 %v1974_v27 }
 0x10b   : >> { %1143 = vmatpush.bf16.msrb.mxu2 %v1990_v28 }
 0x10c   : >> { %1231 = vmatpush.bf16.msrb.mxu3 %v1998_v32 }
 0x10d   : >> { %1058 = vmatpush.bf16.msrb.mxu1 %v1982_v33  ;;  %977 = vmatmul.bf16.vlgmr.msrb.gmra.mxu0 %v919_v36 }
 0x10e   : >> { %1306 = vmatpush.bf16.msra.mxu0 %v2013_v29  ;;  %1144 = vmatmul.bf16.vlgmr.msrb.gmra.mxu2 %v1070_v35 }
 0x10f   : >> { %1232 = vmatmul.bf16.vlgmr.msrb.gmra.mxu3 %v1174_v38 }
 0x110   : >> { %1059 = vmatmul.bf16.vlgmr.msrb.gmra.mxu1 %v1001_v40 }
 0x111   : >> { %1341 = vmatpush.bf16.msra.mxu1 %v1332_v39 }
 0x112   : >> { %1307 = vmatpush.bf16.msra.mxu0 %v2012_v37 }
 0x116   : >> { %1308 = vmatpush.bf16.msra.mxu0 %v2011_v41 }
 0x11a   : >> { %1309 = vmatpush.bf16.msra.mxu0 %v2010_v42 }
 0x11e   : >> { %1310 = vmatpush.bf16.msra.mxu0 %v2009_v43 }
 0x120   : >> { %1933 = vmatmul.msk.bf16.vlgmr.msra.gmra.mxu1 %vm292_vm1, %v1932_v45 }
 0x122   : >> { %1311 = vmatpush.bf16.msra.mxu0 %v2008_v44 }
 0x126   : >> { %1312 = vmatpush.bf16.msra.mxu0 %v2007_v46 }
 0x12a   : >> { %1313 = vmatpush.bf16.msra.mxu0 %v2006_v47 }
 0x12d   : >> { %1314 = vmatmul.bf16.vlgmr.msra.gmra.mxu0 %v1256_v48 }
 0x16a   : >> { %v663_v49 = vpop.f32.mrf.mxu0 }
 0x16d   : >> { %v724_v50 = vpop.f32.mrf.mxu1 }
 0x16e   : >> { %v725_v59 = vadd.f32 %v724_v50, %v663_v49 }
 0x171   : >> { %v805_v51 = vpop.f32.mrf.mxu2 }
 0x172   : >> { %v890_v52 = vpop.f32.mrf.mxu3  ;;  %v665_v53 = vpop.f32.mrf.mxu0  ;;  %v809_v61 = vadd.f32 %v805_v51, %v725_v59 }
 0x174   : >> { %v894_v1 = vadd.f32 %v890_v52, %v809_v61 }
 0x175   : >> { %v726_v54 = vpop.f32.mrf.mxu1 }
 0x179   : >> { %v807_v55 = vpop.f32.mrf.mxu2 }
 0x17a   : >> { %v892_v56 = vpop.f32.mrf.mxu3 }
 0x18a   : >> { %v978_v57 = vpop.f32.mrf.mxu0 }
 0x18b   : >> { %v982_v3 = vadd.f32 %v978_v57, %v894_v1 }
 0x18d   : >> { %v1060_v58 = vpop.f32.mrf.mxu1 }
 0x18e   : >> { %v1064_v6 = vadd.f32 %v1060_v58, %v982_v3 }
 0x191   : >> { %v1145_v60 = vpop.f32.mrf.mxu2 }
 0x192   : >> { %v1233_v62 = vpop.f32.mrf.mxu3  ;;  %v980_v63 = vpop.f32.mrf.mxu0  ;;  %v1149_v7 = vadd.f32 %v1145_v60, %v1064_v6 }
 0x194   : >> { %v1237_v9 = vadd.f32 %v1233_v62, %v1149_v7 }
 0x195   : >> { %v1062_v0 = vpop.f32.mrf.mxu1 }
 0x199   : >> { %v1147_v2 = vpop.f32.mrf.mxu2 }
 0x19a   : >> { %v1235_v4 = vpop.f32.mrf.mxu3 }
 0x19d   : >> { %v1343_v5 = vpop.f32.mrf.mxu1 }
 0x1a5   : >> { %v1345_v8 = vpop.f32.mrf.mxu1 }
 0x1aa   : >> { %v1315_v10 = vpop.f32.mrf.mxu0 }
 0x1ab   : >> { %v1319_v11 = vadd.f32 %v1315_v10, %v1237_v9 }
 0x1ad   : >> { %v1347_v13 = vadd.f32 %v1343_v5, %v1319_v11 }
 0x1af   : >> { %v1352_v14 = vadd.f32 %v2041_v12, %v1347_v13  ;;  %557 = sbr.rel (!%p555_p5) target bundleno = 205 (0xcd), region = 127 }
 0x1b1   : >> { %v1353_v15 = vmax.f32 %v1352_v14, 0.0 }
 0x1b2   : >> { %v1317_v16 = vpop.f32.mrf.mxu0 }
 0x1b3   : >> { %1356 = vst [vmem:[%s1355_s14] sm:$0xff] %v1353_v15 }
 0x1b4 PF: > { %s16_s21 = sadd.s32 1, %s2056_s21  }
 0x1b5   : > { %p13_p6 = scmp.ge.s32.totalorder %s16_s21, 4  }
 0x1b7   :  { %15 = sbr.rel (!%p13_p6) target bundleno = 1 (0x1), region = 138 }

</bundles_post_ra>
